<compile_context>
chip_gen: v7x
topology: tpu7x:2x2x1
jax: 0.10.0
libtpu: 0.0.40
codegen_flags: <defaults>
</compile_context>

<pallas_src>
import functools
import math

import jax
import jax.numpy as jnp
from jax.experimental import pallas as pl
from jax.experimental.pallas import tpu as pltpu


# ----------------------------- kernel helpers ------------------------------ #
def _layer_norm(x, gamma, beta, eps=1e-5):
    # x: (R, D), gamma/beta: (1, D). Matches torch.nn.LayerNorm (biased var).
    mean = jnp.mean(x, axis=-1, keepdims=True)
    var = jnp.mean((x - mean) ** 2, axis=-1, keepdims=True)
    return (x - mean) * jax.lax.rsqrt(var + eps) * gamma + beta


def _gelu_exact(x):
    # torch.nn.GELU() default is the exact erf formulation — kept for parity.
    # TODO(synk): on v5e consider tanh-approx GELU (EUP) if parity allows.
    return 0.5 * x * (1.0 + jax.lax.erf(x * (1.0 / math.sqrt(2.0))))


# ----------------------------- kernel -------------------------------------- #
def encoder_kernel(
    x_ref,                           # (Bb, S, D) activation block
    wqkv_ref, bqkv_ref,              # head-padded fused QKV: (D, 3*H*Dp), (1, 3*H*Dp)
    wo_ref, bo_ref,                  # output projection: (H*Dp, D), (1, D)
    w1_ref, b1_ref, w2_ref, b2_ref,  # feed-forward
    g1_ref, be1_ref, g2_ref, be2_ref,  # LayerNorm params
    o_ref,
    *, num_heads, flat_out,
):
    Bb, S, D = x_ref.shape
    H = num_heads
    Dp = wo_ref.shape[0] // H        # per-head column block, padded to 128 lanes
    rows = Bb * S

    x2 = x_ref[...].reshape(rows, D)            # merge leading dims (free)

    # ---- attention branch --------------------------------------------------
    xn = _layer_norm(x2, g1_ref[...], be1_ref[...])

    # One fused, head-padded QKV projection: bf16 operands, f32 accumulation.
    qkv = jnp.dot(xn.astype(wqkv_ref.dtype), wqkv_ref[...],
                  preferred_element_type=jnp.float32) + bqkv_ref[...]
    qkv = qkv.reshape(Bb, S, 3 * H * Dp).astype(jnp.bfloat16)

    # NOTE: PyTorch source uses scale = q.size(1) ** 0.5 == sqrt(seq_len).
    inv_scale = 1.0 / (S ** 0.5)

    ctx_heads = []
    for h in range(H):               # H is tiny/static; slices are 128-lane aligned
        q = qkv[:, :, h * Dp:(h + 1) * Dp]                    # (Bb, S, Dp)
        k = qkv[:, :, (H + h) * Dp:(H + h + 1) * Dp]
        v = qkv[:, :, (2 * H + h) * Dp:(2 * H + h + 1) * Dp]

        s = jnp.einsum('bqd,bkd->bqk', q, k,
                       preferred_element_type=jnp.float32) * inv_scale
        s = s - jnp.max(s, axis=-1, keepdims=True)
        e = jnp.exp(s)
        # Normalize with an approximate EUP reciprocal instead of a VALU divide.
        p = e * pl.reciprocal(jnp.sum(e, axis=-1, keepdims=True), approx=True)

        ctx_heads.append(jnp.einsum('bqk,bkd->bqd', p.astype(jnp.bfloat16), v,
                                    preferred_element_type=jnp.float32))

    # Heads land in adjacent 128-lane tiles; padded lanes are exactly zero.
    ctx = jnp.concatenate(ctx_heads, axis=-1).reshape(rows, H * Dp)
    # Single output-projection matmul (contraction K = H*Dp).
    attn_proj = jnp.dot(ctx.astype(wo_ref.dtype), wo_ref[...],
                        preferred_element_type=jnp.float32) + bo_ref[...]
    attn = x2 + attn_proj                                     # residual 1

    # ---- feed-forward branch -----------------------------------------------
    yn = _layer_norm(attn, g2_ref[...], be2_ref[...])
    h1 = jnp.dot(yn.astype(w1_ref.dtype), w1_ref[...],
                 preferred_element_type=jnp.float32) + b1_ref[...]
    # Dropout(p) in eval mode == identity.
    # TODO(synk): stochastic dropout (pltpu.prng_*) for training mode.
    h1 = _gelu_exact(h1)
    ff = jnp.dot(h1.astype(w2_ref.dtype), w2_ref[...],
                 preferred_element_type=jnp.float32) + b2_ref[...]

    out = attn + ff                                           # residual 2
    if flat_out:
        # Lane-dense store: (Bb, S*D) with S*D >= 128 -> unmasked vst.
        o_ref[...] = out.reshape(Bb, S * D).astype(o_ref.dtype)
    else:
        o_ref[...] = out.reshape(Bb, S, D).astype(o_ref.dtype)


# --------------------- one-time parameter preparation ----------------------- #
def prepare_encoder_params(params, num_heads, matmul_dtype=jnp.bfloat16):
    """Hoisted, call-once weight re-packing.

    * Per-head Q/K/V weights pack into a single (D, 3*H*Dp) matrix with each
      head's D output columns zero-padded to Dp = round_up(D, 128) lanes, so
      in-kernel head slices are lane-tile-aligned free views.
    * The output projection is zero-padded to (H*Dp, D) rows to match.
    * Matmul weights are cast to bf16 once; biases / LN params stay f32.
    """
    H = num_heads
    D = params["wq"].shape[-1]
    Dp = ((D + 127) // 128) * 128

    def pack_w(w):                       # (H, D, D) -> (D, H*Dp)
        wp = jnp.zeros((H, D, Dp), w.dtype).at[:, :, :D].set(w)
        return jnp.transpose(wp, (1, 0, 2)).reshape(D, H * Dp)

    def pack_b(b):                       # (H, 1, D) -> (1, H*Dp)
        bp = jnp.zeros((H, 1, Dp), b.dtype).at[:, :, :D].set(b)
        return jnp.transpose(bp, (1, 0, 2)).reshape(1, H * Dp)

    wqkv = jnp.concatenate([pack_w(params["wq"]), pack_w(params["wk"]),
                            pack_w(params["wv"])], axis=1)
    bqkv = jnp.concatenate([pack_b(params["bq"]), pack_b(params["bk"]),
                            pack_b(params["bv"])], axis=1)

    wo = params["wo"].reshape(H, D, D)   # row block h multiplies head h's output
    wo_p = jnp.zeros((H, Dp, D), wo.dtype).at[:, :D, :].set(wo).reshape(H * Dp, D)

    return {
        "wqkv": wqkv.astype(matmul_dtype),
        "bqkv": bqkv.astype(jnp.float32),
        "wo": wo_p.astype(matmul_dtype),
        "bo": params["bo"].astype(jnp.float32),
        "w1": params["w1"].astype(matmul_dtype),
        "b1": params["b1"].astype(jnp.float32),
        "w2": params["w2"].astype(matmul_dtype),
        "b2": params["b2"].astype(jnp.float32),
        "g1": params["g1"].astype(jnp.float32),
        "be1": params["be1"].astype(jnp.float32),
        "g2": params["g2"].astype(jnp.float32),
        "be2": params["be2"].astype(jnp.float32),
    }


# ----------------------------- wrapper -------------------------------------- #
def encoder_forward(x, packed, num_heads):
    B, S, D = x.shape
    H = num_heads
    hidden = packed["w1"].shape[1]

    plist = [packed["wqkv"], packed["bqkv"], packed["wo"], packed["bo"],
             packed["w1"], packed["b1"], packed["w2"], packed["b2"],
             packed["g1"], packed["be1"], packed["g2"], packed["be2"]]

    # Single grid step: at this size the kernel is DMA/overhead bound, so a
    # per-TensorCore batch split (v7x) would roughly double weight HBM traffic
    # for negligible compute parallelism.
    # TODO(synk): for large B*S / D add a "parallel" row-block grid axis sized
    # to VMEM (roughly half-size row tiles on v7x) and set vmem_limit_bytes.
    G = 1
    Bb = B // G

    # ---- advisory cost estimate (weights counted once: single grid step) ----
    flops = (
        2 * B * S * D * (3 * H * D)    # QKV projection (logical, unpadded)
        + 2 * B * H * S * S * D        # Q @ K^T
        + 2 * B * H * S * S * D        # P @ V
        + 2 * B * S * (H * D) * D      # output projection
        + 2 * B * S * D * hidden       # FF up
        + 2 * B * S * hidden * D       # FF down
    )
    transcendentals = B * H * S * S + B * S * hidden + B * H * S + 2 * B * S
    bytes_accessed = 2 * int(x.size) * x.dtype.itemsize + sum(
        int(p.size) * p.dtype.itemsize for p in plist)
    cost = pl.CostEstimate(flops=flops, transcendentals=transcendentals,
                           bytes_accessed=bytes_accessed)

    def run(lane_dense_out, single_buffer_weights):
        kernel = functools.partial(encoder_kernel, num_heads=H,
                                   flat_out=lane_dense_out)
        in_specs = [pl.BlockSpec((Bb, S, D), lambda b: (b, 0, 0))]
        for p in plist:
            nd = p.ndim
            kwargs = {}
            if single_buffer_weights:
                # Constant block index across the grid -> one buffer is enough.
                kwargs["pipeline_mode"] = pl.Buffered(1)
            in_specs.append(
                pl.BlockSpec(p.shape, lambda b, nd=nd: (0,) * nd, **kwargs))

        if lane_dense_out:
            out_shape = jax.ShapeDtypeStruct((B, S * D), x.dtype)
            out_specs = pl.BlockSpec((Bb, S * D), lambda b: (b, 0))
        else:
            out_shape = jax.ShapeDtypeStruct((B, S, D), x.dtype)
            out_specs = pl.BlockSpec((Bb, S, D), lambda b: (b, 0, 0))

        out = pl.pallas_call(
            kernel,
            out_shape=out_shape,
            grid_spec=pltpu.PrefetchScalarGridSpec(
                num_scalar_prefetch=0,
                grid=(G,),
                in_specs=in_specs,
                out_specs=out_specs,
            ),
            compiler_params=pltpu.CompilerParams(
                dimension_semantics=("parallel",)),
            cost_estimate=cost,
        )(x, *plist)
        return out.reshape(B, S, D)

    # Prefer the fully optimized configuration; fall back gracefully so the
    # kernel always runs even if a given jax/Mosaic build rejects an option.
    last_err = None
    for cfg in ((True, True), (True, False), (False, False)):
        try:
            return run(*cfg)
        except Exception as err:       # lowering / compile failure for this cfg
            last_err = err
    raise last_err


# ----------------------- pure-JAX reference --------------------------------- #
def encoder_reference(x, params, num_heads):
    def ln(v, g, b, eps=1e-5):
        m = jnp.mean(v, axis=-1, keepdims=True)
        var = jnp.mean((v - m) ** 2, axis=-1, keepdims=True)
        return (v - m) * jax.lax.rsqrt(var + eps) * g + b

    B, S, D = x.shape
    xn = ln(x, params["g1"], params["be1"])
    inv_scale = 1.0 / (S ** 0.5)
    heads = []
    for h in range(num_heads):
        q = xn @ params["wq"][h] + params["bq"][h]
        k = xn @ params["wk"][h] + params["bk"][h]
        v = xn @ params["wv"][h] + params["bv"][h]
        s = jnp.einsum("bqd,bkd->bqk", q, k) * inv_scale
        p = jax.nn.softmax(s, axis=-1)
        heads.append(jnp.einsum("bqk,bkd->bqd", p, v))
    cat = jnp.concatenate(heads, axis=-1)
    attn = x + (cat @ params["wo"] + params["bo"])
    yn = ln(attn, params["g2"], params["be2"])
    h1 = jax.nn.gelu(yn @ params["w1"] + params["b1"], approximate=False)
    return attn + (h1 @ params["w2"] + params["b2"])


# ----------------------------- main ----------------------------------------- #
if __name__ == "__main__":
    B, S, D = 2, 8, 32          # batch, seq, size
    HIDDEN = 64                 # hidden_size
    H = 2                       # num_heads

    key = jax.random.PRNGKey(0)
    ks = jax.random.split(key, 16)

    def u(k, shape, fan_in):
        bound = 1.0 / math.sqrt(fan_in)
        return jax.random.uniform(k, shape, jnp.float32, -bound, bound)

    params = {
        # per-head QKV weights (H, D, D), biases (H, 1, D) — like nn.Linear per head
        "wq": u(ks[0], (H, D, D), D), "bq": u(ks[1], (H, 1, D), D),
        "wk": u(ks[2], (H, D, D), D), "bk": u(ks[3], (H, 1, D), D),
        "wv": u(ks[4], (H, D, D), D), "bv": u(ks[5], (H, 1, D), D),
        # output projection (H*D, D), bias (1, D)
        "wo": u(ks[6], (H * D, D), H * D), "bo": u(ks[7], (1, D), H * D),
        # feed-forward
        "w1": u(ks[8], (D, HIDDEN), D), "b1": u(ks[9], (1, HIDDEN), D),
        "w2": u(ks[10], (HIDDEN, D), HIDDEN), "b2": u(ks[11], (1, D), HIDDEN),
        # LayerNorm affine params
        "g1": jnp.ones((1, D), jnp.float32), "be1": jnp.zeros((1, D), jnp.float32),
        "g2": jnp.ones((1, D), jnp.float32), "be2": jnp.zeros((1, D), jnp.float32),
    }

    x = jax.random.normal(ks[12], (B, S, D), jnp.float32)

    # One-time weight packing (hoisted out of the per-call forward).
    packed = jax.tree_util.tree_map(jax.block_until_ready,
                                    prepare_encoder_params(params, H))

    out = encoder_forward(x, packed, H)
    out = jax.block_until_ready(out)

    ref = encoder_reference(x, params, H)
    assert out.shape == (B, S, D)
    # Tolerance covers bf16 MXU operands (f32 accumulation) and the
    # approximate EUP reciprocal in the softmax.
    assert jnp.allclose(out, ref, rtol=5e-2, atol=5e-2), "mismatch vs reference"

    print("KERNEL_OK")
</pallas_src>

<mosaic_0001>
module attributes {stable_mosaic.version = 11 : i64} {
  func.func @encoder_kernel(%arg0: i32, %arg1: memref<2x8x32xf32, #tpu.memory_space<vmem>>, %arg2: memref<32x768xbf16, #tpu.memory_space<vmem>>, %arg3: memref<1x768xf32, #tpu.memory_space<vmem>>, %arg4: memref<256x32xbf16, #tpu.memory_space<vmem>>, %arg5: memref<1x32xf32, #tpu.memory_space<vmem>>, %arg6: memref<32x64xbf16, #tpu.memory_space<vmem>>, %arg7: memref<1x64xf32, #tpu.memory_space<vmem>>, %arg8: memref<64x32xbf16, #tpu.memory_space<vmem>>, %arg9: memref<1x32xf32, #tpu.memory_space<vmem>>, %arg10: memref<1x32xf32, #tpu.memory_space<vmem>>, %arg11: memref<1x32xf32, #tpu.memory_space<vmem>>, %arg12: memref<1x32xf32, #tpu.memory_space<vmem>>, %arg13: memref<1x32xf32, #tpu.memory_space<vmem>>, %arg14: memref<2x256xf32, #tpu.memory_space<vmem>>) attributes {dimension_semantics = [#tpu.dimension_semantics<parallel>], iteration_bounds = array<i64: 1>, scalar_prefetch = 0 : i64, scratch_operands = 0 : i64, tpu.core_type = #tpu.core_type<tc>, window_params = [{transform_indices = @transform_0, window_bounds = array<i64: 2, 8, 32>}, {pipeline_mode = #tpu.pipeline_mode<synchronous>, transform_indices = @transform_1, window_bounds = array<i64: 32, 768>}, {pipeline_mode = #tpu.pipeline_mode<synchronous>, transform_indices = @transform_2, window_bounds = array<i64: 1, 768>}, {pipeline_mode = #tpu.pipeline_mode<synchronous>, transform_indices = @transform_3, window_bounds = array<i64: 256, 32>}, {pipeline_mode = #tpu.pipeline_mode<synchronous>, transform_indices = @transform_4, window_bounds = array<i64: 1, 32>}, {pipeline_mode = #tpu.pipeline_mode<synchronous>, transform_indices = @transform_5, window_bounds = array<i64: 32, 64>}, {pipeline_mode = #tpu.pipeline_mode<synchronous>, transform_indices = @transform_6, window_bounds = array<i64: 1, 64>}, {pipeline_mode = #tpu.pipeline_mode<synchronous>, transform_indices = @transform_7, window_bounds = array<i64: 64, 32>}, {pipeline_mode = #tpu.pipeline_mode<synchronous>, transform_indices = @transform_8, window_bounds = array<i64: 1, 32>}, {pipeline_mode = #tpu.pipeline_mode<synchronous>, transform_indices = @transform_9, window_bounds = array<i64: 1, 32>}, {pipeline_mode = #tpu.pipeline_mode<synchronous>, transform_indices = @transform_10, window_bounds = array<i64: 1, 32>}, {pipeline_mode = #tpu.pipeline_mode<synchronous>, transform_indices = @transform_11, window_bounds = array<i64: 1, 32>}, {pipeline_mode = #tpu.pipeline_mode<synchronous>, transform_indices = @transform_12, window_bounds = array<i64: 1, 32>}, {transform_indices = @transform_13, window_bounds = array<i64: 2, 256>}]} {
    %c0 = arith.constant 0 : index
    %c0_0 = arith.constant 0 : index
    %c0_1 = arith.constant 0 : index
    %0 = vector.load %arg1[%c0, %c0_0, %c0_1] : memref<2x8x32xf32, #tpu.memory_space<vmem>>, vector<2x8x32xf32>
    %1 = vector.shape_cast %0 : vector<2x8x32xf32> to vector<16x32xf32>
    %c0_2 = arith.constant 0 : index
    %c0_3 = arith.constant 0 : index
    %2 = vector.load %arg10[%c0_2, %c0_3] : memref<1x32xf32, #tpu.memory_space<vmem>>, vector<1x32xf32>
    %c0_4 = arith.constant 0 : index
    %c0_5 = arith.constant 0 : index
    %3 = vector.load %arg11[%c0_4, %c0_5] : memref<1x32xf32, #tpu.memory_space<vmem>>, vector<1x32xf32>
    %cst = arith.constant dense<0.000000e+00> : vector<16xf32>
    %4 = vector.multi_reduction <add>, %1, %cst [1] : vector<16x32xf32> to vector<16xf32>
    %5 = vector.shape_cast %4 : vector<16xf32> to vector<16x1xf32>
    %cst_6 = arith.constant 3.200000e+01 : f32
    %6 = vector.broadcast %cst_6 : f32 to vector<16x1xf32>
    %7 = arith.divf %5, %6 : vector<16x1xf32>
    %8 = vector.broadcast %7 : vector<16x1xf32> to vector<16x32xf32>
    %9 = arith.subf %1, %8 : vector<16x32xf32>
    %10 = arith.mulf %9, %9 : vector<16x32xf32>
    %cst_7 = arith.constant dense<0.000000e+00> : vector<16xf32>
    %11 = vector.multi_reduction <add>, %10, %cst_7 [1] : vector<16x32xf32> to vector<16xf32>
    %12 = vector.shape_cast %11 : vector<16xf32> to vector<16x1xf32>
    %cst_8 = arith.constant 3.200000e+01 : f32
    %13 = vector.broadcast %cst_8 : f32 to vector<16x1xf32>
    %14 = arith.divf %12, %13 : vector<16x1xf32>
    %15 = vector.broadcast %7 : vector<16x1xf32> to vector<16x32xf32>
    %16 = arith.subf %1, %15 : vector<16x32xf32>
    %cst_9 = arith.constant 9.99999974E-6 : f32
    %17 = vector.broadcast %cst_9 : f32 to vector<16x1xf32>
    %18 = arith.addf %14, %17 : vector<16x1xf32>
    %19 = math.rsqrt %18 : vector<16x1xf32>
    %20 = vector.broadcast %19 : vector<16x1xf32> to vector<16x32xf32>
    %21 = arith.mulf %16, %20 : vector<16x32xf32>
    %22 = vector.broadcast %2 : vector<1x32xf32> to vector<16x32xf32>
    %23 = arith.mulf %21, %22 : vector<16x32xf32>
    %24 = vector.broadcast %3 : vector<1x32xf32> to vector<16x32xf32>
    %25 = arith.addf %23, %24 : vector<16x32xf32>
    %26 = arith.truncf %25 : vector<16x32xf32> to vector<16x32xbf16>
    %c0_10 = arith.constant 0 : index
    %c0_11 = arith.constant 0 : index
    %27 = vector.load %arg2[%c0_10, %c0_11] : memref<32x768xbf16, #tpu.memory_space<vmem>>, vector<32x768xbf16>
    %cst_12 = arith.constant dense<0.000000e+00> : vector<16x768xf32>
    %28 = tpu.matmul %26, %27, %cst_12 {dimension_numbers = #tpu.dot_dimension_numbers<[1], [0], [0], [1], [0, 0, 1, 1], [], []>} : vector<16x32xbf16>, vector<32x768xbf16>, vector<16x768xf32> -> vector<16x768xf32>
    %c0_13 = arith.constant 0 : index
    %c0_14 = arith.constant 0 : index
    %29 = vector.load %arg3[%c0_13, %c0_14] : memref<1x768xf32, #tpu.memory_space<vmem>>, vector<1x768xf32>
    %30 = vector.broadcast %29 : vector<1x768xf32> to vector<16x768xf32>
    %31 = arith.addf %28, %30 : vector<16x768xf32>
    %32 = vector.shape_cast %31 : vector<16x768xf32> to vector<2x8x768xf32>
    %33 = arith.truncf %32 : vector<2x8x768xf32> to vector<2x8x768xbf16>
    %34 = vector.extract_strided_slice %33 {offsets = [0, 0, 0], sizes = [2, 8, 128], strides = [1, 1, 1]} : vector<2x8x768xbf16> to vector<2x8x128xbf16>
    %35 = vector.extract_strided_slice %33 {offsets = [0, 0, 256], sizes = [2, 8, 128], strides = [1, 1, 1]} : vector<2x8x768xbf16> to vector<2x8x128xbf16>
    %36 = vector.extract_strided_slice %33 {offsets = [0, 0, 512], sizes = [2, 8, 128], strides = [1, 1, 1]} : vector<2x8x768xbf16> to vector<2x8x128xbf16>
    "tpu.trace_start"() <{level = 10 : i32, message = "bqd,bkd->bqk"}> : () -> ()
    %cst_15 = arith.constant dense<0.000000e+00> : vector<2x8x8xf32>
    %37 = tpu.matmul %34, %35, %cst_15 {dimension_numbers = #tpu.dot_dimension_numbers<[2], [2], [1], [1], [0, 0, 0, 1, 1, 1], [0], [0]>} : vector<2x8x128xbf16>, vector<2x8x128xbf16>, vector<2x8x8xf32> -> vector<2x8x8xf32>
    "tpu.trace_stop"() : () -> ()
    %cst_16 = arith.constant 0.353553385 : f32
    %38 = vector.broadcast %cst_16 : f32 to vector<2x8x8xf32>
    %39 = arith.mulf %37, %38 : vector<2x8x8xf32>
    %cst_17 = arith.constant dense<0xFF800000> : vector<2x8xf32>
    %40 = vector.multi_reduction <maximumf>, %39, %cst_17 [2] : vector<2x8x8xf32> to vector<2x8xf32>
    %41 = vector.shape_cast %40 : vector<2x8xf32> to vector<2x8x1xf32>
    %42 = vector.broadcast %41 : vector<2x8x1xf32> to vector<2x8x8xf32>
    %43 = arith.subf %39, %42 : vector<2x8x8xf32>
    %44 = math.exp %43 : vector<2x8x8xf32>
    %cst_18 = arith.constant dense<0.000000e+00> : vector<2x8xf32>
    %45 = vector.multi_reduction <add>, %44, %cst_18 [2] : vector<2x8x8xf32> to vector<2x8xf32>
    %46 = vector.shape_cast %45 : vector<2x8xf32> to vector<2x8x1xf32>
    %47 = tpu.reciprocal %46 {approx = true} : vector<2x8x1xf32> -> vector<2x8x1xf32>
    %48 = vector.broadcast %47 : vector<2x8x1xf32> to vector<2x8x8xf32>
    %49 = arith.mulf %44, %48 : vector<2x8x8xf32>
    %50 = arith.truncf %49 : vector<2x8x8xf32> to vector<2x8x8xbf16>
    "tpu.trace_start"() <{level = 10 : i32, message = "bqk,bkd->bqd"}> : () -> ()
    %cst_19 = arith.constant dense<0.000000e+00> : vector<2x8x128xf32>
    %51 = tpu.matmul %50, %36, %cst_19 {dimension_numbers = #tpu.dot_dimension_numbers<[2], [1], [1], [2], [0, 0, 0, 1, 1, 2], [0], [0]>} : vector<2x8x8xbf16>, vector<2x8x128xbf16>, vector<2x8x128xf32> -> vector<2x8x128xf32>
    "tpu.trace_stop"() : () -> ()
    %52 = vector.extract_strided_slice %33 {offsets = [0, 0, 128], sizes = [2, 8, 128], strides = [1, 1, 1]} : vector<2x8x768xbf16> to vector<2x8x128xbf16>
    %53 = vector.extract_strided_slice %33 {offsets = [0, 0, 384], sizes = [2, 8, 128], strides = [1, 1, 1]} : vector<2x8x768xbf16> to vector<2x8x128xbf16>
    %54 = vector.extract_strided_slice %33 {offsets = [0, 0, 640], sizes = [2, 8, 128], strides = [1, 1, 1]} : vector<2x8x768xbf16> to vector<2x8x128xbf16>
    "tpu.trace_start"() <{level = 10 : i32, message = "bqd,bkd->bqk"}> : () -> ()
    %cst_20 = arith.constant dense<0.000000e+00> : vector<2x8x8xf32>
    %55 = tpu.matmul %52, %53, %cst_20 {dimension_numbers = #tpu.dot_dimension_numbers<[2], [2], [1], [1], [0, 0, 0, 1, 1, 1], [0], [0]>} : vector<2x8x128xbf16>, vector<2x8x128xbf16>, vector<2x8x8xf32> -> vector<2x8x8xf32>
    "tpu.trace_stop"() : () -> ()
    %cst_21 = arith.constant 0.353553385 : f32
    %56 = vector.broadcast %cst_21 : f32 to vector<2x8x8xf32>
    %57 = arith.mulf %55, %56 : vector<2x8x8xf32>
    %cst_22 = arith.constant dense<0xFF800000> : vector<2x8xf32>
    %58 = vector.multi_reduction <maximumf>, %57, %cst_22 [2] : vector<2x8x8xf32> to vector<2x8xf32>
    %59 = vector.shape_cast %58 : vector<2x8xf32> to vector<2x8x1xf32>
    %60 = vector.broadcast %59 : vector<2x8x1xf32> to vector<2x8x8xf32>
    %61 = arith.subf %57, %60 : vector<2x8x8xf32>
    %62 = math.exp %61 : vector<2x8x8xf32>
    %cst_23 = arith.constant dense<0.000000e+00> : vector<2x8xf32>
    %63 = vector.multi_reduction <add>, %62, %cst_23 [2] : vector<2x8x8xf32> to vector<2x8xf32>
    %64 = vector.shape_cast %63 : vector<2x8xf32> to vector<2x8x1xf32>
    %65 = tpu.reciprocal %64 {approx = true} : vector<2x8x1xf32> -> vector<2x8x1xf32>
    %66 = vector.broadcast %65 : vector<2x8x1xf32> to vector<2x8x8xf32>
    %67 = arith.mulf %62, %66 : vector<2x8x8xf32>
    %68 = arith.truncf %67 : vector<2x8x8xf32> to vector<2x8x8xbf16>
    "tpu.trace_start"() <{level = 10 : i32, message = "bqk,bkd->bqd"}> : () -> ()
    %cst_24 = arith.constant dense<0.000000e+00> : vector<2x8x128xf32>
    %69 = tpu.matmul %68, %54, %cst_24 {dimension_numbers = #tpu.dot_dimension_numbers<[2], [1], [1], [2], [0, 0, 0, 1, 1, 2], [0], [0]>} : vector<2x8x8xbf16>, vector<2x8x128xbf16>, vector<2x8x128xf32> -> vector<2x8x128xf32>
    "tpu.trace_stop"() : () -> ()
    %70 = tpu.concatenate %51, %69 in 2 : vector<2x8x128xf32>, vector<2x8x128xf32> -> vector<2x8x256xf32>
    %71 = vector.shape_cast %70 : vector<2x8x256xf32> to vector<16x256xf32>
    %72 = arith.truncf %71 : vector<16x256xf32> to vector<16x256xbf16>
    %c0_25 = arith.constant 0 : index
    %c0_26 = arith.constant 0 : index
    %73 = vector.load %arg4[%c0_25, %c0_26] : memref<256x32xbf16, #tpu.memory_space<vmem>>, vector<256x32xbf16>
    %cst_27 = arith.constant dense<0.000000e+00> : vector<16x32xf32>
    %74 = tpu.matmul %72, %73, %cst_27 {dimension_numbers = #tpu.dot_dimension_numbers<[1], [0], [0], [1], [0, 0, 1, 1], [], []>} : vector<16x256xbf16>, vector<256x32xbf16>, vector<16x32xf32> -> vector<16x32xf32>
    %c0_28 = arith.constant 0 : index
    %c0_29 = arith.constant 0 : index
    %75 = vector.load %arg5[%c0_28, %c0_29] : memref<1x32xf32, #tpu.memory_space<vmem>>, vector<1x32xf32>
    %76 = vector.broadcast %75 : vector<1x32xf32> to vector<16x32xf32>
    %77 = arith.addf %74, %76 : vector<16x32xf32>
    %78 = arith.addf %1, %77 : vector<16x32xf32>
    %c0_30 = arith.constant 0 : index
    %c0_31 = arith.constant 0 : index
    %79 = vector.load %arg12[%c0_30, %c0_31] : memref<1x32xf32, #tpu.memory_space<vmem>>, vector<1x32xf32>
    %c0_32 = arith.constant 0 : index
    %c0_33 = arith.constant 0 : index
    %80 = vector.load %arg13[%c0_32, %c0_33] : memref<1x32xf32, #tpu.memory_space<vmem>>, vector<1x32xf32>
    %cst_34 = arith.constant dense<0.000000e+00> : vector<16xf32>
    %81 = vector.multi_reduction <add>, %78, %cst_34 [1] : vector<16x32xf32> to vector<16xf32>
    %82 = vector.shape_cast %81 : vector<16xf32> to vector<16x1xf32>
    %cst_35 = arith.constant 3.200000e+01 : f32
    %83 = vector.broadcast %cst_35 : f32 to vector<16x1xf32>
    %84 = arith.divf %82, %83 : vector<16x1xf32>
    %85 = vector.broadcast %84 : vector<16x1xf32> to vector<16x32xf32>
    %86 = arith.subf %78, %85 : vector<16x32xf32>
    %87 = arith.mulf %86, %86 : vector<16x32xf32>
    %cst_36 = arith.constant dense<0.000000e+00> : vector<16xf32>
    %88 = vector.multi_reduction <add>, %87, %cst_36 [1] : vector<16x32xf32> to vector<16xf32>
    %89 = vector.shape_cast %88 : vector<16xf32> to vector<16x1xf32>
    %cst_37 = arith.constant 3.200000e+01 : f32
    %90 = vector.broadcast %cst_37 : f32 to vector<16x1xf32>
    %91 = arith.divf %89, %90 : vector<16x1xf32>
    %92 = vector.broadcast %84 : vector<16x1xf32> to vector<16x32xf32>
    %93 = arith.subf %78, %92 : vector<16x32xf32>
    %cst_38 = arith.constant 9.99999974E-6 : f32
    %94 = vector.broadcast %cst_38 : f32 to vector<16x1xf32>
    %95 = arith.addf %91, %94 : vector<16x1xf32>
    %96 = math.rsqrt %95 : vector<16x1xf32>
    %97 = vector.broadcast %96 : vector<16x1xf32> to vector<16x32xf32>
    %98 = arith.mulf %93, %97 : vector<16x32xf32>
    %99 = vector.broadcast %79 : vector<1x32xf32> to vector<16x32xf32>
    %100 = arith.mulf %98, %99 : vector<16x32xf32>
    %101 = vector.broadcast %80 : vector<1x32xf32> to vector<16x32xf32>
    %102 = arith.addf %100, %101 : vector<16x32xf32>
    %103 = arith.truncf %102 : vector<16x32xf32> to vector<16x32xbf16>
    %c0_39 = arith.constant 0 : index
    %c0_40 = arith.constant 0 : index
    %104 = vector.load %arg6[%c0_39, %c0_40] : memref<32x64xbf16, #tpu.memory_space<vmem>>, vector<32x64xbf16>
    %cst_41 = arith.constant dense<0.000000e+00> : vector<16x64xf32>
    %105 = tpu.matmul %103, %104, %cst_41 {dimension_numbers = #tpu.dot_dimension_numbers<[1], [0], [0], [1], [0, 0, 1, 1], [], []>} : vector<16x32xbf16>, vector<32x64xbf16>, vector<16x64xf32> -> vector<16x64xf32>
    %c0_42 = arith.constant 0 : index
    %c0_43 = arith.constant 0 : index
    %106 = vector.load %arg7[%c0_42, %c0_43] : memref<1x64xf32, #tpu.memory_space<vmem>>, vector<1x64xf32>
    %107 = vector.broadcast %106 : vector<1x64xf32> to vector<16x64xf32>
    %108 = arith.addf %105, %107 : vector<16x64xf32>
    %cst_44 = arith.constant 5.000000e-01 : f32
    %109 = vector.broadcast %cst_44 : f32 to vector<16x64xf32>
    %110 = arith.mulf %109, %108 : vector<16x64xf32>
    %cst_45 = arith.constant 0.707106769 : f32
    %111 = vector.broadcast %cst_45 : f32 to vector<16x64xf32>
    %112 = arith.mulf %108, %111 : vector<16x64xf32>
    %113 = math.erf %112 : vector<16x64xf32>
    %cst_46 = arith.constant 1.000000e+00 : f32
    %114 = vector.broadcast %cst_46 : f32 to vector<16x64xf32>
    %115 = arith.addf %114, %113 : vector<16x64xf32>
    %116 = arith.mulf %110, %115 : vector<16x64xf32>
    %117 = arith.truncf %116 : vector<16x64xf32> to vector<16x64xbf16>
    %c0_47 = arith.constant 0 : index
    %c0_48 = arith.constant 0 : index
    %118 = vector.load %arg8[%c0_47, %c0_48] : memref<64x32xbf16, #tpu.memory_space<vmem>>, vector<64x32xbf16>
    %cst_49 = arith.constant dense<0.000000e+00> : vector<16x32xf32>
    %119 = tpu.matmul %117, %118, %cst_49 {dimension_numbers = #tpu.dot_dimension_numbers<[1], [0], [0], [1], [0, 0, 1, 1], [], []>} : vector<16x64xbf16>, vector<64x32xbf16>, vector<16x32xf32> -> vector<16x32xf32>
    %c0_50 = arith.constant 0 : index
    %c0_51 = arith.constant 0 : index
    %120 = vector.load %arg9[%c0_50, %c0_51] : memref<1x32xf32, #tpu.memory_space<vmem>>, vector<1x32xf32>
    %121 = vector.broadcast %120 : vector<1x32xf32> to vector<16x32xf32>
    %122 = arith.addf %119, %121 : vector<16x32xf32>
    %123 = arith.addf %78, %122 : vector<16x32xf32>
    %124 = vector.shape_cast %123 : vector<16x32xf32> to vector<2x256xf32>
    %c0_52 = arith.constant 0 : index
    %c0_53 = arith.constant 0 : index
    %125 = vector.load %arg14[%c0_52, %c0_53] : memref<2x256xf32, #tpu.memory_space<vmem>>, vector<2x256xf32>
    tpu.vector_store %arg14[%c0_52, %c0_53], %124 {strides = array<i32>} : memref<2x256xf32, #tpu.memory_space<vmem>>, vector<2x256xf32>,
    return
  }
  func.func @transform_0(%arg0: i32) -> (i32, i32, i32) {
    %c0_i32 = arith.constant 0 : i32
    %c0_i32_0 = arith.constant 0 : i32
    %c0_i32_1 = arith.constant 0 : i32
    return %arg0, %c0_i32, %c0_i32_0 : i32, i32, i32
  }
  func.func @transform_1(%arg0: i32) -> (i32, i32) {
    %c0_i32 = arith.constant 0 : i32
    %c0_i32_0 = arith.constant 0 : i32
    %c0_i32_1 = arith.constant 0 : i32
    return %c0_i32, %c0_i32_0 : i32, i32
  }
  func.func @transform_2(%arg0: i32) -> (i32, i32) {
    %c0_i32 = arith.constant 0 : i32
    %c0_i32_0 = arith.constant 0 : i32
    %c0_i32_1 = arith.constant 0 : i32
    return %c0_i32, %c0_i32_0 : i32, i32
  }
  func.func @transform_3(%arg0: i32) -> (i32, i32) {
    %c0_i32 = arith.constant 0 : i32
    %c0_i32_0 = arith.constant 0 : i32
    %c0_i32_1 = arith.constant 0 : i32
    return %c0_i32, %c0_i32_0 : i32, i32
  }
  func.func @transform_4(%arg0: i32) -> (i32, i32) {
    %c0_i32 = arith.constant 0 : i32
    %c0_i32_0 = arith.constant 0 : i32
    %c0_i32_1 = arith.constant 0 : i32
    return %c0_i32, %c0_i32_0 : i32, i32
  }
  func.func @transform_5(%arg0: i32) -> (i32, i32) {
    %c0_i32 = arith.constant 0 : i32
    %c0_i32_0 = arith.constant 0 : i32
    %c0_i32_1 = arith.constant 0 : i32
    return %c0_i32, %c0_i32_0 : i32, i32
  }
  func.func @transform_6(%arg0: i32) -> (i32, i32) {
    %c0_i32 = arith.constant 0 : i32
    %c0_i32_0 = arith.constant 0 : i32
    %c0_i32_1 = arith.constant 0 : i32
    return %c0_i32, %c0_i32_0 : i32, i32
  }
  func.func @transform_7(%arg0: i32) -> (i32, i32) {
    %c0_i32 = arith.constant 0 : i32
    %c0_i32_0 = arith.constant 0 : i32
    %c0_i32_1 = arith.constant 0 : i32
    return %c0_i32, %c0_i32_0 : i32, i32
  }
  func.func @transform_8(%arg0: i32) -> (i32, i32) {
    %c0_i32 = arith.constant 0 : i32
    %c0_i32_0 = arith.constant 0 : i32
    %c0_i32_1 = arith.constant 0 : i32
    return %c0_i32, %c0_i32_0 : i32, i32
  }
  func.func @transform_9(%arg0: i32) -> (i32, i32) {
    %c0_i32 = arith.constant 0 : i32
    %c0_i32_0 = arith.constant 0 : i32
    %c0_i32_1 = arith.constant 0 : i32
    return %c0_i32, %c0_i32_0 : i32, i32
  }
  func.func @transform_10(%arg0: i32) -> (i32, i32) {
    %c0_i32 = arith.constant 0 : i32
    %c0_i32_0 = arith.constant 0 : i32
    %c0_i32_1 = arith.constant 0 : i32
    return %c0_i32, %c0_i32_0 : i32, i32
  }
  func.func @transform_11(%arg0: i32) -> (i32, i32) {
    %c0_i32 = arith.constant 0 : i32
    %c0_i32_0 = arith.constant 0 : i32
    %c0_i32_1 = arith.constant 0 : i32
    return %c0_i32, %c0_i32_0 : i32, i32
  }
  func.func @transform_12(%arg0: i32) -> (i32, i32) {
    %c0_i32 = arith.constant 0 : i32
    %c0_i32_0 = arith.constant 0 : i32
    %c0_i32_1 = arith.constant 0 : i32
    return %c0_i32, %c0_i32_0 : i32, i32
  }
  func.func @transform_13(%arg0: i32) -> (i32, i32) {
    %c0_i32 = arith.constant 0 : i32
    %c0_i32_0 = arith.constant 0 : i32
    return %arg0, %c0_i32 : i32, i32
  }
}

module attributes {stable_mosaic.version = 11 : i64} {
  func.func @encoder_kernel(%arg0: i32, %arg1: memref<2x8x32xf32, #tpu.memory_space<vmem>>, %arg2: memref<32x768xbf16, #tpu.memory_space<vmem>>, %arg3: memref<1x768xf32, #tpu.memory_space<vmem>>, %arg4: memref<256x32xbf16, #tpu.memory_space<vmem>>, %arg5: memref<1x32xf32, #tpu.memory_space<vmem>>, %arg6: memref<32x64xbf16, #tpu.memory_space<vmem>>, %arg7: memref<1x64xf32, #tpu.memory_space<vmem>>, %arg8: memref<64x32xbf16, #tpu.memory_space<vmem>>, %arg9: memref<1x32xf32, #tpu.memory_space<vmem>>, %arg10: memref<1x32xf32, #tpu.memory_space<vmem>>, %arg11: memref<1x32xf32, #tpu.memory_space<vmem>>, %arg12: memref<1x32xf32, #tpu.memory_space<vmem>>, %arg13: memref<1x32xf32, #tpu.memory_space<vmem>>, %arg14: memref<2x256xf32, #tpu.memory_space<vmem>>) attributes {dimension_semantics = [#tpu.dimension_semantics<parallel>], iteration_bounds = array<i64: 1>, scalar_prefetch = 0 : i64, scratch_operands = 0 : i64, tpu.core_type = #tpu.core_type<tc>, window_params = [{transform_indices = @transform_0, window_bounds = array<i64: 2, 8, 32>}, {pipeline_mode = #tpu.pipeline_mode<synchronous>, transform_indices = @transform_1, window_bounds = array<i64: 32, 768>}, {pipeline_mode = #tpu.pipeline_mode<synchronous>, transform_indices = @transform_2, window_bounds = array<i64: 1, 768>}, {pipeline_mode = #tpu.pipeline_mode<synchronous>, transform_indices = @transform_3, window_bounds = array<i64: 256, 32>}, {pipeline_mode = #tpu.pipeline_mode<synchronous>, transform_indices = @transform_4, window_bounds = array<i64: 1, 32>}, {pipeline_mode = #tpu.pipeline_mode<synchronous>, transform_indices = @transform_5, window_bounds = array<i64: 32, 64>}, {pipeline_mode = #tpu.pipeline_mode<synchronous>, transform_indices = @transform_6, window_bounds = array<i64: 1, 64>}, {pipeline_mode = #tpu.pipeline_mode<synchronous>, transform_indices = @transform_7, window_bounds = array<i64: 64, 32>}, {pipeline_mode = #tpu.pipeline_mode<synchronous>, transform_indices = @transform_8, window_bounds = array<i64: 1, 32>}, {pipeline_mode = #tpu.pipeline_mode<synchronous>, transform_indices = @transform_9, window_bounds = array<i64: 1, 32>}, {pipeline_mode = #tpu.pipeline_mode<synchronous>, transform_indices = @transform_10, window_bounds = array<i64: 1, 32>}, {pipeline_mode = #tpu.pipeline_mode<synchronous>, transform_indices = @transform_11, window_bounds = array<i64: 1, 32>}, {pipeline_mode = #tpu.pipeline_mode<synchronous>, transform_indices = @transform_12, window_bounds = array<i64: 1, 32>}, {transform_indices = @transform_13, window_bounds = array<i64: 2, 256>}]} {
    %c0 = arith.constant 0 : index
    %c0_0 = arith.constant 0 : index
    %c0_1 = arith.constant 0 : index
    %0 = vector.load %arg1[%c0, %c0_0, %c0_1] : memref<2x8x32xf32, #tpu.memory_space<vmem>>, vector<2x8x32xf32>
    %1 = vector.shape_cast %0 : vector<2x8x32xf32> to vector<16x32xf32>
    %c0_2 = arith.constant 0 : index
    %c0_3 = arith.constant 0 : index
    %2 = vector.load %arg10[%c0_2, %c0_3] : memref<1x32xf32, #tpu.memory_space<vmem>>, vector<1x32xf32>
    %c0_4 = arith.constant 0 : index
    %c0_5 = arith.constant 0 : index
    %3 = vector.load %arg11[%c0_4, %c0_5] : memref<1x32xf32, #tpu.memory_space<vmem>>, vector<1x32xf32>
    %cst = arith.constant dense<0.000000e+00> : vector<16xf32>
    %4 = vector.multi_reduction <add>, %1, %cst [1] : vector<16x32xf32> to vector<16xf32>
    %5 = vector.shape_cast %4 : vector<16xf32> to vector<16x1xf32>
    %cst_6 = arith.constant 3.200000e+01 : f32
    %6 = vector.broadcast %cst_6 : f32 to vector<16x1xf32>
    %7 = arith.divf %5, %6 : vector<16x1xf32>
    %8 = vector.broadcast %7 : vector<16x1xf32> to vector<16x32xf32>
    %9 = arith.subf %1, %8 : vector<16x32xf32>
    %10 = arith.mulf %9, %9 : vector<16x32xf32>
    %cst_7 = arith.constant dense<0.000000e+00> : vector<16xf32>
    %11 = vector.multi_reduction <add>, %10, %cst_7 [1] : vector<16x32xf32> to vector<16xf32>
    %12 = vector.shape_cast %11 : vector<16xf32> to vector<16x1xf32>
    %cst_8 = arith.constant 3.200000e+01 : f32
    %13 = vector.broadcast %cst_8 : f32 to vector<16x1xf32>
    %14 = arith.divf %12, %13 : vector<16x1xf32>
    %15 = vector.broadcast %7 : vector<16x1xf32> to vector<16x32xf32>
    %16 = arith.subf %1, %15 : vector<16x32xf32>
    %cst_9 = arith.constant 9.99999974E-6 : f32
    %17 = vector.broadcast %cst_9 : f32 to vector<16x1xf32>
    %18 = arith.addf %14, %17 : vector<16x1xf32>
    %19 = math.rsqrt %18 : vector<16x1xf32>
    %20 = vector.broadcast %19 : vector<16x1xf32> to vector<16x32xf32>
    %21 = arith.mulf %16, %20 : vector<16x32xf32>
    %22 = vector.broadcast %2 : vector<1x32xf32> to vector<16x32xf32>
    %23 = arith.mulf %21, %22 : vector<16x32xf32>
    %24 = vector.broadcast %3 : vector<1x32xf32> to vector<16x32xf32>
    %25 = arith.addf %23, %24 : vector<16x32xf32>
    %26 = arith.truncf %25 : vector<16x32xf32> to vector<16x32xbf16>
    %c0_10 = arith.constant 0 : index
    %c0_11 = arith.constant 0 : index
    %27 = vector.load %arg2[%c0_10, %c0_11] : memref<32x768xbf16, #tpu.memory_space<vmem>>, vector<32x768xbf16>
    %cst_12 = arith.constant dense<0.000000e+00> : vector<16x768xf32>
    %28 = tpu.matmul %26, %27, %cst_12 {dimension_numbers = #tpu.dot_dimension_numbers<[1], [0], [0], [1], [0, 0, 1, 1], [], []>} : vector<16x32xbf16>, vector<32x768xbf16>, vector<16x768xf32> -> vector<16x768xf32>
    %c0_13 = arith.constant 0 : index
    %c0_14 = arith.constant 0 : index
    %29 = vector.load %arg3[%c0_13, %c0_14] : memref<1x768xf32, #tpu.memory_space<vmem>>, vector<1x768xf32>
    %30 = vector.broadcast %29 : vector<1x768xf32> to vector<16x768xf32>
    %31 = arith.addf %28, %30 : vector<16x768xf32>
    %32 = vector.shape_cast %31 : vector<16x768xf32> to vector<2x8x768xf32>
    %33 = arith.truncf %32 : vector<2x8x768xf32> to vector<2x8x768xbf16>
    %34 = vector.extract_strided_slice %33 {offsets = [0, 0, 0], sizes = [2, 8, 128], strides = [1, 1, 1]} : vector<2x8x768xbf16> to vector<2x8x128xbf16>
    %35 = vector.extract_strided_slice %33 {offsets = [0, 0, 256], sizes = [2, 8, 128], strides = [1, 1, 1]} : vector<2x8x768xbf16> to vector<2x8x128xbf16>
    %36 = vector.extract_strided_slice %33 {offsets = [0, 0, 512], sizes = [2, 8, 128], strides = [1, 1, 1]} : vector<2x8x768xbf16> to vector<2x8x128xbf16>
    "tpu.trace_start"() <{level = 10 : i32, message = "bqd,bkd->bqk"}> : () -> ()
    %cst_15 = arith.constant dense<0.000000e+00> : vector<2x8x8xf32>
    %37 = tpu.matmul %34, %35, %cst_15 {dimension_numbers = #tpu.dot_dimension_numbers<[2], [2], [1], [1], [0, 0, 0, 1, 1, 1], [0], [0]>} : vector<2x8x128xbf16>, vector<2x8x128xbf16>, vector<2x8x8xf32> -> vector<2x8x8xf32>
    "tpu.trace_stop"() : () -> ()
    %cst_16 = arith.constant 0.353553385 : f32
    %38 = vector.broadcast %cst_16 : f32 to vector<2x8x8xf32>
    %39 = arith.mulf %37, %38 : vector<2x8x8xf32>
    %cst_17 = arith.constant dense<0xFF800000> : vector<2x8xf32>
    %40 = vector.multi_reduction <maximumf>, %39, %cst_17 [2] : vector<2x8x8xf32> to vector<2x8xf32>
    %41 = vector.shape_cast %40 : vector<2x8xf32> to vector<2x8x1xf32>
    %42 = vector.broadcast %41 : vector<2x8x1xf32> to vector<2x8x8xf32>
    %43 = arith.subf %39, %42 : vector<2x8x8xf32>
    %44 = math.exp %43 : vector<2x8x8xf32>
    %cst_18 = arith.constant dense<0.000000e+00> : vector<2x8xf32>
    %45 = vector.multi_reduction <add>, %44, %cst_18 [2] : vector<2x8x8xf32> to vector<2x8xf32>
    %46 = vector.shape_cast %45 : vector<2x8xf32> to vector<2x8x1xf32>
    %47 = tpu.reciprocal %46 {approx = true} : vector<2x8x1xf32> -> vector<2x8x1xf32>
    %48 = vector.broadcast %47 : vector<2x8x1xf32> to vector<2x8x8xf32>
    %49 = arith.mulf %44, %48 : vector<2x8x8xf32>
    %50 = arith.truncf %49 : vector<2x8x8xf32> to vector<2x8x8xbf16>
    "tpu.trace_start"() <{level = 10 : i32, message = "bqk,bkd->bqd"}> : () -> ()
    %cst_19 = arith.constant dense<0.000000e+00> : vector<2x8x128xf32>
    %51 = tpu.matmul %50, %36, %cst_19 {dimension_numbers = #tpu.dot_dimension_numbers<[2], [1], [1], [2], [0, 0, 0, 1, 1, 2], [0], [0]>} : vector<2x8x8xbf16>, vector<2x8x128xbf16>, vector<2x8x128xf32> -> vector<2x8x128xf32>
    "tpu.trace_stop"() : () -> ()
    %52 = vector.extract_strided_slice %33 {offsets = [0, 0, 128], sizes = [2, 8, 128], strides = [1, 1, 1]} : vector<2x8x768xbf16> to vector<2x8x128xbf16>
    %53 = vector.extract_strided_slice %33 {offsets = [0, 0, 384], sizes = [2, 8, 128], strides = [1, 1, 1]} : vector<2x8x768xbf16> to vector<2x8x128xbf16>
    %54 = vector.extract_strided_slice %33 {offsets = [0, 0, 640], sizes = [2, 8, 128], strides = [1, 1, 1]} : vector<2x8x768xbf16> to vector<2x8x128xbf16>
    "tpu.trace_start"() <{level = 10 : i32, message = "bqd,bkd->bqk"}> : () -> ()
    %cst_20 = arith.constant dense<0.000000e+00> : vector<2x8x8xf32>
    %55 = tpu.matmul %52, %53, %cst_20 {dimension_numbers = #tpu.dot_dimension_numbers<[2], [2], [1], [1], [0, 0, 0, 1, 1, 1], [0], [0]>} : vector<2x8x128xbf16>, vector<2x8x128xbf16>, vector<2x8x8xf32> -> vector<2x8x8xf32>
    "tpu.trace_stop"() : () -> ()
    %cst_21 = arith.constant 0.353553385 : f32
    %56 = vector.broadcast %cst_21 : f32 to vector<2x8x8xf32>
    %57 = arith.mulf %55, %56 : vector<2x8x8xf32>
    %cst_22 = arith.constant dense<0xFF800000> : vector<2x8xf32>
    %58 = vector.multi_reduction <maximumf>, %57, %cst_22 [2] : vector<2x8x8xf32> to vector<2x8xf32>
    %59 = vector.shape_cast %58 : vector<2x8xf32> to vector<2x8x1xf32>
    %60 = vector.broadcast %59 : vector<2x8x1xf32> to vector<2x8x8xf32>
    %61 = arith.subf %57, %60 : vector<2x8x8xf32>
    %62 = math.exp %61 : vector<2x8x8xf32>
    %cst_23 = arith.constant dense<0.000000e+00> : vector<2x8xf32>
    %63 = vector.multi_reduction <add>, %62, %cst_23 [2] : vector<2x8x8xf32> to vector<2x8xf32>
    %64 = vector.shape_cast %63 : vector<2x8xf32> to vector<2x8x1xf32>
    %65 = tpu.reciprocal %64 {approx = true} : vector<2x8x1xf32> -> vector<2x8x1xf32>
    %66 = vector.broadcast %65 : vector<2x8x1xf32> to vector<2x8x8xf32>
    %67 = arith.mulf %62, %66 : vector<2x8x8xf32>
    %68 = arith.truncf %67 : vector<2x8x8xf32> to vector<2x8x8xbf16>
    "tpu.trace_start"() <{level = 10 : i32, message = "bqk,bkd->bqd"}> : () -> ()
    %cst_24 = arith.constant dense<0.000000e+00> : vector<2x8x128xf32>
    %69 = tpu.matmul %68, %54, %cst_24 {dimension_numbers = #tpu.dot_dimension_numbers<[2], [1], [1], [2], [0, 0, 0, 1, 1, 2], [0], [0]>} : vector<2x8x8xbf16>, vector<2x8x128xbf16>, vector<2x8x128xf32> -> vector<2x8x128xf32>
    "tpu.trace_stop"() : () -> ()
    %70 = tpu.concatenate %51, %69 in 2 : vector<2x8x128xf32>, vector<2x8x128xf32> -> vector<2x8x256xf32>
    %71 = vector.shape_cast %70 : vector<2x8x256xf32> to vector<16x256xf32>
    %72 = arith.truncf %71 : vector<16x256xf32> to vector<16x256xbf16>
    %c0_25 = arith.constant 0 : index
    %c0_26 = arith.constant 0 : index
    %73 = vector.load %arg4[%c0_25, %c0_26] : memref<256x32xbf16, #tpu.memory_space<vmem>>, vector<256x32xbf16>
    %cst_27 = arith.constant dense<0.000000e+00> : vector<16x32xf32>
    %74 = tpu.matmul %72, %73, %cst_27 {dimension_numbers = #tpu.dot_dimension_numbers<[1], [0], [0], [1], [0, 0, 1, 1], [], []>} : vector<16x256xbf16>, vector<256x32xbf16>, vector<16x32xf32> -> vector<16x32xf32>
    %c0_28 = arith.constant 0 : index
    %c0_29 = arith.constant 0 : index
    %75 = vector.load %arg5[%c0_28, %c0_29] : memref<1x32xf32, #tpu.memory_space<vmem>>, vector<1x32xf32>
    %76 = vector.broadcast %75 : vector<1x32xf32> to vector<16x32xf32>
    %77 = arith.addf %74, %76 : vector<16x32xf32>
    %78 = arith.addf %1, %77 : vector<16x32xf32>
    %c0_30 = arith.constant 0 : index
    %c0_31 = arith.constant 0 : index
    %79 = vector.load %arg12[%c0_30, %c0_31] : memref<1x32xf32, #tpu.memory_space<vmem>>, vector<1x32xf32>
    %c0_32 = arith.constant 0 : index
    %c0_33 = arith.constant 0 : index
    %80 = vector.load %arg13[%c0_32, %c0_33] : memref<1x32xf32, #tpu.memory_space<vmem>>, vector<1x32xf32>
    %cst_34 = arith.constant dense<0.000000e+00> : vector<16xf32>
    %81 = vector.multi_reduction <add>, %78, %cst_34 [1] : vector<16x32xf32> to vector<16xf32>
    %82 = vector.shape_cast %81 : vector<16xf32> to vector<16x1xf32>
    %cst_35 = arith.constant 3.200000e+01 : f32
    %83 = vector.broadcast %cst_35 : f32 to vector<16x1xf32>
    %84 = arith.divf %82, %83 : vector<16x1xf32>
    %85 = vector.broadcast %84 : vector<16x1xf32> to vector<16x32xf32>
    %86 = arith.subf %78, %85 : vector<16x32xf32>
    %87 = arith.mulf %86, %86 : vector<16x32xf32>
    %cst_36 = arith.constant dense<0.000000e+00> : vector<16xf32>
    %88 = vector.multi_reduction <add>, %87, %cst_36 [1] : vector<16x32xf32> to vector<16xf32>
    %89 = vector.shape_cast %88 : vector<16xf32> to vector<16x1xf32>
    %cst_37 = arith.constant 3.200000e+01 : f32
    %90 = vector.broadcast %cst_37 : f32 to vector<16x1xf32>
    %91 = arith.divf %89, %90 : vector<16x1xf32>
    %92 = vector.broadcast %84 : vector<16x1xf32> to vector<16x32xf32>
    %93 = arith.subf %78, %92 : vector<16x32xf32>
    %cst_38 = arith.constant 9.99999974E-6 : f32
    %94 = vector.broadcast %cst_38 : f32 to vector<16x1xf32>
    %95 = arith.addf %91, %94 : vector<16x1xf32>
    %96 = math.rsqrt %95 : vector<16x1xf32>
    %97 = vector.broadcast %96 : vector<16x1xf32> to vector<16x32xf32>
    %98 = arith.mulf %93, %97 : vector<16x32xf32>
    %99 = vector.broadcast %79 : vector<1x32xf32> to vector<16x32xf32>
    %100 = arith.mulf %98, %99 : vector<16x32xf32>
    %101 = vector.broadcast %80 : vector<1x32xf32> to vector<16x32xf32>
    %102 = arith.addf %100, %101 : vector<16x32xf32>
    %103 = arith.truncf %102 : vector<16x32xf32> to vector<16x32xbf16>
    %c0_39 = arith.constant 0 : index
    %c0_40 = arith.constant 0 : index
    %104 = vector.load %arg6[%c0_39, %c0_40] : memref<32x64xbf16, #tpu.memory_space<vmem>>, vector<32x64xbf16>
    %cst_41 = arith.constant dense<0.000000e+00> : vector<16x64xf32>
    %105 = tpu.matmul %103, %104, %cst_41 {dimension_numbers = #tpu.dot_dimension_numbers<[1], [0], [0], [1], [0, 0, 1, 1], [], []>} : vector<16x32xbf16>, vector<32x64xbf16>, vector<16x64xf32> -> vector<16x64xf32>
    %c0_42 = arith.constant 0 : index
    %c0_43 = arith.constant 0 : index
    %106 = vector.load %arg7[%c0_42, %c0_43] : memref<1x64xf32, #tpu.memory_space<vmem>>, vector<1x64xf32>
    %107 = vector.broadcast %106 : vector<1x64xf32> to vector<16x64xf32>
    %108 = arith.addf %105, %107 : vector<16x64xf32>
    %cst_44 = arith.constant 5.000000e-01 : f32
    %109 = vector.broadcast %cst_44 : f32 to vector<16x64xf32>
    %110 = arith.mulf %109, %108 : vector<16x64xf32>
    %cst_45 = arith.constant 0.707106769 : f32
    %111 = vector.broadcast %cst_45 : f32 to vector<16x64xf32>
    %112 = arith.mulf %108, %111 : vector<16x64xf32>
    %113 = math.erf %112 : vector<16x64xf32>
    %cst_46 = arith.constant 1.000000e+00 : f32
    %114 = vector.broadcast %cst_46 : f32 to vector<16x64xf32>
    %115 = arith.addf %114, %113 : vector<16x64xf32>
    %116 = arith.mulf %110, %115 : vector<16x64xf32>
    %117 = arith.truncf %116 : vector<16x64xf32> to vector<16x64xbf16>
    %c0_47 = arith.constant 0 : index
    %c0_48 = arith.constant 0 : index
    %118 = vector.load %arg8[%c0_47, %c0_48] : memref<64x32xbf16, #tpu.memory_space<vmem>>, vector<64x32xbf16>
    %cst_49 = arith.constant dense<0.000000e+00> : vector<16x32xf32>
    %119 = tpu.matmul %117, %118, %cst_49 {dimension_numbers = #tpu.dot_dimension_numbers<[1], [0], [0], [1], [0, 0, 1, 1], [], []>} : vector<16x64xbf16>, vector<64x32xbf16>, vector<16x32xf32> -> vector<16x32xf32>
    %c0_50 = arith.constant 0 : index
    %c0_51 = arith.constant 0 : index
    %120 = vector.load %arg9[%c0_50, %c0_51] : memref<1x32xf32, #tpu.memory_space<vmem>>, vector<1x32xf32>
    %121 = vector.broadcast %120 : vector<1x32xf32> to vector<16x32xf32>
    %122 = arith.addf %119, %121 : vector<16x32xf32>
    %123 = arith.addf %78, %122 : vector<16x32xf32>
    %124 = vector.shape_cast %123 : vector<16x32xf32> to vector<2x256xf32>
    %c0_52 = arith.constant 0 : index
    %c0_53 = arith.constant 0 : index
    %125 = vector.load %arg14[%c0_52, %c0_53] : memref<2x256xf32, #tpu.memory_space<vmem>>, vector<2x256xf32>
    tpu.vector_store %arg14[%c0_52, %c0_53], %124 {strides = array<i32>} : memref<2x256xf32, #tpu.memory_space<vmem>>, vector<2x256xf32>,
    return
  }
  func.func @transform_0(%arg0: i32) -> (i32, i32, i32) {
    %c0_i32 = arith.constant 0 : i32
    %c0_i32_0 = arith.constant 0 : i32
    %c0_i32_1 = arith.constant 0 : i32
    return %arg0, %c0_i32, %c0_i32_0 : i32, i32, i32
  }
  func.func @transform_1(%arg0: i32) -> (i32, i32) {
    %c0_i32 = arith.constant 0 : i32
    %c0_i32_0 = arith.constant 0 : i32
    %c0_i32_1 = arith.constant 0 : i32
    return %c0_i32, %c0_i32_0 : i32, i32
  }
  func.func @transform_2(%arg0: i32) -> (i32, i32) {
    %c0_i32 = arith.constant 0 : i32
    %c0_i32_0 = arith.constant 0 : i32
    %c0_i32_1 = arith.constant 0 : i32
    return %c0_i32, %c0_i32_0 : i32, i32
  }
  func.func @transform_3(%arg0: i32) -> (i32, i32) {
    %c0_i32 = arith.constant 0 : i32
    %c0_i32_0 = arith.constant 0 : i32
    %c0_i32_1 = arith.constant 0 : i32
    return %c0_i32, %c0_i32_0 : i32, i32
  }
  func.func @transform_4(%arg0: i32) -> (i32, i32) {
    %c0_i32 = arith.constant 0 : i32
    %c0_i32_0 = arith.constant 0 : i32
    %c0_i32_1 = arith.constant 0 : i32
    return %c0_i32, %c0_i32_0 : i32, i32
  }
  func.func @transform_5(%arg0: i32) -> (i32, i32) {
    %c0_i32 = arith.constant 0 : i32
    %c0_i32_0 = arith.constant 0 : i32
    %c0_i32_1 = arith.constant 0 : i32
    return %c0_i32, %c0_i32_0 : i32, i32
  }
  func.func @transform_6(%arg0: i32) -> (i32, i32) {
    %c0_i32 = arith.constant 0 : i32
    %c0_i32_0 = arith.constant 0 : i32
    %c0_i32_1 = arith.constant 0 : i32
    return %c0_i32, %c0_i32_0 : i32, i32
  }
  func.func @transform_7(%arg0: i32) -> (i32, i32) {
    %c0_i32 = arith.constant 0 : i32
    %c0_i32_0 = arith.constant 0 : i32
    %c0_i32_1 = arith.constant 0 : i32
    return %c0_i32, %c0_i32_0 : i32, i32
  }
  func.func @transform_8(%arg0: i32) -> (i32, i32) {
    %c0_i32 = arith.constant 0 : i32
    %c0_i32_0 = arith.constant 0 : i32
    %c0_i32_1 = arith.constant 0 : i32
    return %c0_i32, %c0_i32_0 : i32, i32
  }
  func.func @transform_9(%arg0: i32) -> (i32, i32) {
    %c0_i32 = arith.constant 0 : i32
    %c0_i32_0 = arith.constant 0 : i32
    %c0_i32_1 = arith.constant 0 : i32
    return %c0_i32, %c0_i32_0 : i32, i32
  }
  func.func @transform_10(%arg0: i32) -> (i32, i32) {
    %c0_i32 = arith.constant 0 : i32
    %c0_i32_0 = arith.constant 0 : i32
    %c0_i32_1 = arith.constant 0 : i32
    return %c0_i32, %c0_i32_0 : i32, i32
  }
  func.func @transform_11(%arg0: i32) -> (i32, i32) {
    %c0_i32 = arith.constant 0 : i32
    %c0_i32_0 = arith.constant 0 : i32
    %c0_i32_1 = arith.constant 0 : i32
    return %c0_i32, %c0_i32_0 : i32, i32
  }
  func.func @transform_12(%arg0: i32) -> (i32, i32) {
    %c0_i32 = arith.constant 0 : i32
    %c0_i32_0 = arith.constant 0 : i32
    %c0_i32_1 = arith.constant 0 : i32
    return %c0_i32, %c0_i32_0 : i32, i32
  }
  func.func @transform_13(%arg0: i32) -> (i32, i32) {
    %c0_i32 = arith.constant 0 : i32
    %c0_i32_0 = arith.constant 0 : i32
    return %arg0, %c0_i32 : i32, i32
  }
}

module attributes {stable_mosaic.version = 11 : i64} {
  func.func @encoder_kernel(%arg0: i32, %arg1: memref<2x8x32xf32, #tpu.memory_space<vmem>>, %arg2: memref<32x768xbf16, #tpu.memory_space<vmem>>, %arg3: memref<1x768xf32, #tpu.memory_space<vmem>>, %arg4: memref<256x32xbf16, #tpu.memory_space<vmem>>, %arg5: memref<1x32xf32, #tpu.memory_space<vmem>>, %arg6: memref<32x64xbf16, #tpu.memory_space<vmem>>, %arg7: memref<1x64xf32, #tpu.memory_space<vmem>>, %arg8: memref<64x32xbf16, #tpu.memory_space<vmem>>, %arg9: memref<1x32xf32, #tpu.memory_space<vmem>>, %arg10: memref<1x32xf32, #tpu.memory_space<vmem>>, %arg11: memref<1x32xf32, #tpu.memory_space<vmem>>, %arg12: memref<1x32xf32, #tpu.memory_space<vmem>>, %arg13: memref<1x32xf32, #tpu.memory_space<vmem>>, %arg14: memref<2x8x32xf32, #tpu.memory_space<vmem>>) attributes {dimension_semantics = [#tpu.dimension_semantics<parallel>], iteration_bounds = array<i64: 1>, scalar_prefetch = 0 : i64, scratch_operands = 0 : i64, tpu.core_type = #tpu.core_type<tc>, window_params = [{transform_indices = @transform_0, window_bounds = array<i64: 2, 8, 32>}, {pipeline_mode = #tpu.pipeline_mode<synchronous>, transform_indices = @transform_1, window_bounds = array<i64: 32, 768>}, {pipeline_mode = #tpu.pipeline_mode<synchronous>, transform_indices = @transform_2, window_bounds = array<i64: 1, 768>}, {pipeline_mode = #tpu.pipeline_mode<synchronous>, transform_indices = @transform_3, window_bounds = array<i64: 256, 32>}, {pipeline_mode = #tpu.pipeline_mode<synchronous>, transform_indices = @transform_4, window_bounds = array<i64: 1, 32>}, {pipeline_mode = #tpu.pipeline_mode<synchronous>, transform_indices = @transform_5, window_bounds = array<i64: 32, 64>}, {pipeline_mode = #tpu.pipeline_mode<synchronous>, transform_indices = @transform_6, window_bounds = array<i64: 1, 64>}, {pipeline_mode = #tpu.pipeline_mode<synchronous>, transform_indices = @transform_7, window_bounds = array<i64: 64, 32>}, {pipeline_mode = #tpu.pipeline_mode<synchronous>, transform_indices = @transform_8, window_bounds = array<i64: 1, 32>}, {pipeline_mode = #tpu.pipeline_mode<synchronous>, transform_indices = @transform_9, window_bounds = array<i64: 1, 32>}, {pipeline_mode = #tpu.pipeline_mode<synchronous>, transform_indices = @transform_10, window_bounds = array<i64: 1, 32>}, {pipeline_mode = #tpu.pipeline_mode<synchronous>, transform_indices = @transform_11, window_bounds = array<i64: 1, 32>}, {pipeline_mode = #tpu.pipeline_mode<synchronous>, transform_indices = @transform_12, window_bounds = array<i64: 1, 32>}, {transform_indices = @transform_13, window_bounds = array<i64: 2, 8, 32>}]} {
    %c0 = arith.constant 0 : index
    %c0_0 = arith.constant 0 : index
    %c0_1 = arith.constant 0 : index
    %0 = vector.load %arg1[%c0, %c0_0, %c0_1] : memref<2x8x32xf32, #tpu.memory_space<vmem>>, vector<2x8x32xf32>
    %1 = vector.shape_cast %0 : vector<2x8x32xf32> to vector<16x32xf32>
    %c0_2 = arith.constant 0 : index
    %c0_3 = arith.constant 0 : index
    %2 = vector.load %arg10[%c0_2, %c0_3] : memref<1x32xf32, #tpu.memory_space<vmem>>, vector<1x32xf32>
    %c0_4 = arith.constant 0 : index
    %c0_5 = arith.constant 0 : index
    %3 = vector.load %arg11[%c0_4, %c0_5] : memref<1x32xf32, #tpu.memory_space<vmem>>, vector<1x32xf32>
    %cst = arith.constant dense<0.000000e+00> : vector<16xf32>
    %4 = vector.multi_reduction <add>, %1, %cst [1] : vector<16x32xf32> to vector<16xf32>
    %5 = vector.shape_cast %4 : vector<16xf32> to vector<16x1xf32>
    %cst_6 = arith.constant 3.200000e+01 : f32
    %6 = vector.broadcast %cst_6 : f32 to vector<16x1xf32>
    %7 = arith.divf %5, %6 : vector<16x1xf32>
    %8 = vector.broadcast %7 : vector<16x1xf32> to vector<16x32xf32>
    %9 = arith.subf %1, %8 : vector<16x32xf32>
    %10 = arith.mulf %9, %9 : vector<16x32xf32>
    %cst_7 = arith.constant dense<0.000000e+00> : vector<16xf32>
    %11 = vector.multi_reduction <add>, %10, %cst_7 [1] : vector<16x32xf32> to vector<16xf32>
    %12 = vector.shape_cast %11 : vector<16xf32> to vector<16x1xf32>
    %cst_8 = arith.constant 3.200000e+01 : f32
    %13 = vector.broadcast %cst_8 : f32 to vector<16x1xf32>
    %14 = arith.divf %12, %13 : vector<16x1xf32>
    %15 = vector.broadcast %7 : vector<16x1xf32> to vector<16x32xf32>
    %16 = arith.subf %1, %15 : vector<16x32xf32>
    %cst_9 = arith.constant 9.99999974E-6 : f32
    %17 = vector.broadcast %cst_9 : f32 to vector<16x1xf32>
    %18 = arith.addf %14, %17 : vector<16x1xf32>
    %19 = math.rsqrt %18 : vector<16x1xf32>
    %20 = vector.broadcast %19 : vector<16x1xf32> to vector<16x32xf32>
    %21 = arith.mulf %16, %20 : vector<16x32xf32>
    %22 = vector.broadcast %2 : vector<1x32xf32> to vector<16x32xf32>
    %23 = arith.mulf %21, %22 : vector<16x32xf32>
    %24 = vector.broadcast %3 : vector<1x32xf32> to vector<16x32xf32>
    %25 = arith.addf %23, %24 : vector<16x32xf32>
    %26 = arith.truncf %25 : vector<16x32xf32> to vector<16x32xbf16>
    %c0_10 = arith.constant 0 : index
    %c0_11 = arith.constant 0 : index
    %27 = vector.load %arg2[%c0_10, %c0_11] : memref<32x768xbf16, #tpu.memory_space<vmem>>, vector<32x768xbf16>
    %cst_12 = arith.constant dense<0.000000e+00> : vector<16x768xf32>
    %28 = tpu.matmul %26, %27, %cst_12 {dimension_numbers = #tpu.dot_dimension_numbers<[1], [0], [0], [1], [0, 0, 1, 1], [], []>} : vector<16x32xbf16>, vector<32x768xbf16>, vector<16x768xf32> -> vector<16x768xf32>
    %c0_13 = arith.constant 0 : index
    %c0_14 = arith.constant 0 : index
    %29 = vector.load %arg3[%c0_13, %c0_14] : memref<1x768xf32, #tpu.memory_space<vmem>>, vector<1x768xf32>
    %30 = vector.broadcast %29 : vector<1x768xf32> to vector<16x768xf32>
    %31 = arith.addf %28, %30 : vector<16x768xf32>
    %32 = vector.shape_cast %31 : vector<16x768xf32> to vector<2x8x768xf32>
    %33 = arith.truncf %32 : vector<2x8x768xf32> to vector<2x8x768xbf16>
    %34 = vector.extract_strided_slice %33 {offsets = [0, 0, 0], sizes = [2, 8, 128], strides = [1, 1, 1]} : vector<2x8x768xbf16> to vector<2x8x128xbf16>
    %35 = vector.extract_strided_slice %33 {offsets = [0, 0, 256], sizes = [2, 8, 128], strides = [1, 1, 1]} : vector<2x8x768xbf16> to vector<2x8x128xbf16>
    %36 = vector.extract_strided_slice %33 {offsets = [0, 0, 512], sizes = [2, 8, 128], strides = [1, 1, 1]} : vector<2x8x768xbf16> to vector<2x8x128xbf16>
    "tpu.trace_start"() <{level = 10 : i32, message = "bqd,bkd->bqk"}> : () -> ()
    %cst_15 = arith.constant dense<0.000000e+00> : vector<2x8x8xf32>
    %37 = tpu.matmul %34, %35, %cst_15 {dimension_numbers = #tpu.dot_dimension_numbers<[2], [2], [1], [1], [0, 0, 0, 1, 1, 1], [0], [0]>} : vector<2x8x128xbf16>, vector<2x8x128xbf16>, vector<2x8x8xf32> -> vector<2x8x8xf32>
    "tpu.trace_stop"() : () -> ()
    %cst_16 = arith.constant 0.353553385 : f32
    %38 = vector.broadcast %cst_16 : f32 to vector<2x8x8xf32>
    %39 = arith.mulf %37, %38 : vector<2x8x8xf32>
    %cst_17 = arith.constant dense<0xFF800000> : vector<2x8xf32>
    %40 = vector.multi_reduction <maximumf>, %39, %cst_17 [2] : vector<2x8x8xf32> to vector<2x8xf32>
    %41 = vector.shape_cast %40 : vector<2x8xf32> to vector<2x8x1xf32>
    %42 = vector.broadcast %41 : vector<2x8x1xf32> to vector<2x8x8xf32>
    %43 = arith.subf %39, %42 : vector<2x8x8xf32>
    %44 = math.exp %43 : vector<2x8x8xf32>
    %cst_18 = arith.constant dense<0.000000e+00> : vector<2x8xf32>
    %45 = vector.multi_reduction <add>, %44, %cst_18 [2] : vector<2x8x8xf32> to vector<2x8xf32>
    %46 = vector.shape_cast %45 : vector<2x8xf32> to vector<2x8x1xf32>
    %47 = tpu.reciprocal %46 {approx = true} : vector<2x8x1xf32> -> vector<2x8x1xf32>
    %48 = vector.broadcast %47 : vector<2x8x1xf32> to vector<2x8x8xf32>
    %49 = arith.mulf %44, %48 : vector<2x8x8xf32>
    %50 = arith.truncf %49 : vector<2x8x8xf32> to vector<2x8x8xbf16>
    "tpu.trace_start"() <{level = 10 : i32, message = "bqk,bkd->bqd"}> : () -> ()
    %cst_19 = arith.constant dense<0.000000e+00> : vector<2x8x128xf32>
    %51 = tpu.matmul %50, %36, %cst_19 {dimension_numbers = #tpu.dot_dimension_numbers<[2], [1], [1], [2], [0, 0, 0, 1, 1, 2], [0], [0]>} : vector<2x8x8xbf16>, vector<2x8x128xbf16>, vector<2x8x128xf32> -> vector<2x8x128xf32>
    "tpu.trace_stop"() : () -> ()
    %52 = vector.extract_strided_slice %33 {offsets = [0, 0, 128], sizes = [2, 8, 128], strides = [1, 1, 1]} : vector<2x8x768xbf16> to vector<2x8x128xbf16>
    %53 = vector.extract_strided_slice %33 {offsets = [0, 0, 384], sizes = [2, 8, 128], strides = [1, 1, 1]} : vector<2x8x768xbf16> to vector<2x8x128xbf16>
    %54 = vector.extract_strided_slice %33 {offsets = [0, 0, 640], sizes = [2, 8, 128], strides = [1, 1, 1]} : vector<2x8x768xbf16> to vector<2x8x128xbf16>
    "tpu.trace_start"() <{level = 10 : i32, message = "bqd,bkd->bqk"}> : () -> ()
    %cst_20 = arith.constant dense<0.000000e+00> : vector<2x8x8xf32>
    %55 = tpu.matmul %52, %53, %cst_20 {dimension_numbers = #tpu.dot_dimension_numbers<[2], [2], [1], [1], [0, 0, 0, 1, 1, 1], [0], [0]>} : vector<2x8x128xbf16>, vector<2x8x128xbf16>, vector<2x8x8xf32> -> vector<2x8x8xf32>
    "tpu.trace_stop"() : () -> ()
    %cst_21 = arith.constant 0.353553385 : f32
    %56 = vector.broadcast %cst_21 : f32 to vector<2x8x8xf32>
    %57 = arith.mulf %55, %56 : vector<2x8x8xf32>
    %cst_22 = arith.constant dense<0xFF800000> : vector<2x8xf32>
    %58 = vector.multi_reduction <maximumf>, %57, %cst_22 [2] : vector<2x8x8xf32> to vector<2x8xf32>
    %59 = vector.shape_cast %58 : vector<2x8xf32> to vector<2x8x1xf32>
    %60 = vector.broadcast %59 : vector<2x8x1xf32> to vector<2x8x8xf32>
    %61 = arith.subf %57, %60 : vector<2x8x8xf32>
    %62 = math.exp %61 : vector<2x8x8xf32>
    %cst_23 = arith.constant dense<0.000000e+00> : vector<2x8xf32>
    %63 = vector.multi_reduction <add>, %62, %cst_23 [2] : vector<2x8x8xf32> to vector<2x8xf32>
    %64 = vector.shape_cast %63 : vector<2x8xf32> to vector<2x8x1xf32>
    %65 = tpu.reciprocal %64 {approx = true} : vector<2x8x1xf32> -> vector<2x8x1xf32>
    %66 = vector.broadcast %65 : vector<2x8x1xf32> to vector<2x8x8xf32>
    %67 = arith.mulf %62, %66 : vector<2x8x8xf32>
    %68 = arith.truncf %67 : vector<2x8x8xf32> to vector<2x8x8xbf16>
    "tpu.trace_start"() <{level = 10 : i32, message = "bqk,bkd->bqd"}> : () -> ()
    %cst_24 = arith.constant dense<0.000000e+00> : vector<2x8x128xf32>
    %69 = tpu.matmul %68, %54, %cst_24 {dimension_numbers = #tpu.dot_dimension_numbers<[2], [1], [1], [2], [0, 0, 0, 1, 1, 2], [0], [0]>} : vector<2x8x8xbf16>, vector<2x8x128xbf16>, vector<2x8x128xf32> -> vector<2x8x128xf32>
    "tpu.trace_stop"() : () -> ()
    %70 = tpu.concatenate %51, %69 in 2 : vector<2x8x128xf32>, vector<2x8x128xf32> -> vector<2x8x256xf32>
    %71 = vector.shape_cast %70 : vector<2x8x256xf32> to vector<16x256xf32>
    %72 = arith.truncf %71 : vector<16x256xf32> to vector<16x256xbf16>
    %c0_25 = arith.constant 0 : index
    %c0_26 = arith.constant 0 : index
    %73 = vector.load %arg4[%c0_25, %c0_26] : memref<256x32xbf16, #tpu.memory_space<vmem>>, vector<256x32xbf16>
    %cst_27 = arith.constant dense<0.000000e+00> : vector<16x32xf32>
    %74 = tpu.matmul %72, %73, %cst_27 {dimension_numbers = #tpu.dot_dimension_numbers<[1], [0], [0], [1], [0, 0, 1, 1], [], []>} : vector<16x256xbf16>, vector<256x32xbf16>, vector<16x32xf32> -> vector<16x32xf32>
    %c0_28 = arith.constant 0 : index
    %c0_29 = arith.constant 0 : index
    %75 = vector.load %arg5[%c0_28, %c0_29] : memref<1x32xf32, #tpu.memory_space<vmem>>, vector<1x32xf32>
    %76 = vector.broadcast %75 : vector<1x32xf32> to vector<16x32xf32>
    %77 = arith.addf %74, %76 : vector<16x32xf32>
    %78 = arith.addf %1, %77 : vector<16x32xf32>
    %c0_30 = arith.constant 0 : index
    %c0_31 = arith.constant 0 : index
    %79 = vector.load %arg12[%c0_30, %c0_31] : memref<1x32xf32, #tpu.memory_space<vmem>>, vector<1x32xf32>
    %c0_32 = arith.constant 0 : index
    %c0_33 = arith.constant 0 : index
    %80 = vector.load %arg13[%c0_32, %c0_33] : memref<1x32xf32, #tpu.memory_space<vmem>>, vector<1x32xf32>
    %cst_34 = arith.constant dense<0.000000e+00> : vector<16xf32>
    %81 = vector.multi_reduction <add>, %78, %cst_34 [1] : vector<16x32xf32> to vector<16xf32>
    %82 = vector.shape_cast %81 : vector<16xf32> to vector<16x1xf32>
    %cst_35 = arith.constant 3.200000e+01 : f32
    %83 = vector.broadcast %cst_35 : f32 to vector<16x1xf32>
    %84 = arith.divf %82, %83 : vector<16x1xf32>
    %85 = vector.broadcast %84 : vector<16x1xf32> to vector<16x32xf32>
    %86 = arith.subf %78, %85 : vector<16x32xf32>
    %87 = arith.mulf %86, %86 : vector<16x32xf32>
    %cst_36 = arith.constant dense<0.000000e+00> : vector<16xf32>
    %88 = vector.multi_reduction <add>, %87, %cst_36 [1] : vector<16x32xf32> to vector<16xf32>
    %89 = vector.shape_cast %88 : vector<16xf32> to vector<16x1xf32>
    %cst_37 = arith.constant 3.200000e+01 : f32
    %90 = vector.broadcast %cst_37 : f32 to vector<16x1xf32>
    %91 = arith.divf %89, %90 : vector<16x1xf32>
    %92 = vector.broadcast %84 : vector<16x1xf32> to vector<16x32xf32>
    %93 = arith.subf %78, %92 : vector<16x32xf32>
    %cst_38 = arith.constant 9.99999974E-6 : f32
    %94 = vector.broadcast %cst_38 : f32 to vector<16x1xf32>
    %95 = arith.addf %91, %94 : vector<16x1xf32>
    %96 = math.rsqrt %95 : vector<16x1xf32>
    %97 = vector.broadcast %96 : vector<16x1xf32> to vector<16x32xf32>
    %98 = arith.mulf %93, %97 : vector<16x32xf32>
    %99 = vector.broadcast %79 : vector<1x32xf32> to vector<16x32xf32>
    %100 = arith.mulf %98, %99 : vector<16x32xf32>
    %101 = vector.broadcast %80 : vector<1x32xf32> to vector<16x32xf32>
    %102 = arith.addf %100, %101 : vector<16x32xf32>
    %103 = arith.truncf %102 : vector<16x32xf32> to vector<16x32xbf16>
    %c0_39 = arith.constant 0 : index
    %c0_40 = arith.constant 0 : index
    %104 = vector.load %arg6[%c0_39, %c0_40] : memref<32x64xbf16, #tpu.memory_space<vmem>>, vector<32x64xbf16>
    %cst_41 = arith.constant dense<0.000000e+00> : vector<16x64xf32>
    %105 = tpu.matmul %103, %104, %cst_41 {dimension_numbers = #tpu.dot_dimension_numbers<[1], [0], [0], [1], [0, 0, 1, 1], [], []>} : vector<16x32xbf16>, vector<32x64xbf16>, vector<16x64xf32> -> vector<16x64xf32>
    %c0_42 = arith.constant 0 : index
    %c0_43 = arith.constant 0 : index
    %106 = vector.load %arg7[%c0_42, %c0_43] : memref<1x64xf32, #tpu.memory_space<vmem>>, vector<1x64xf32>
    %107 = vector.broadcast %106 : vector<1x64xf32> to vector<16x64xf32>
    %108 = arith.addf %105, %107 : vector<16x64xf32>
    %cst_44 = arith.constant 5.000000e-01 : f32
    %109 = vector.broadcast %cst_44 : f32 to vector<16x64xf32>
    %110 = arith.mulf %109, %108 : vector<16x64xf32>
    %cst_45 = arith.constant 0.707106769 : f32
    %111 = vector.broadcast %cst_45 : f32 to vector<16x64xf32>
    %112 = arith.mulf %108, %111 : vector<16x64xf32>
    %113 = math.erf %112 : vector<16x64xf32>
    %cst_46 = arith.constant 1.000000e+00 : f32
    %114 = vector.broadcast %cst_46 : f32 to vector<16x64xf32>
    %115 = arith.addf %114, %113 : vector<16x64xf32>
    %116 = arith.mulf %110, %115 : vector<16x64xf32>
    %117 = arith.truncf %116 : vector<16x64xf32> to vector<16x64xbf16>
    %c0_47 = arith.constant 0 : index
    %c0_48 = arith.constant 0 : index
    %118 = vector.load %arg8[%c0_47, %c0_48] : memref<64x32xbf16, #tpu.memory_space<vmem>>, vector<64x32xbf16>
    %cst_49 = arith.constant dense<0.000000e+00> : vector<16x32xf32>
    %119 = tpu.matmul %117, %118, %cst_49 {dimension_numbers = #tpu.dot_dimension_numbers<[1], [0], [0], [1], [0, 0, 1, 1], [], []>} : vector<16x64xbf16>, vector<64x32xbf16>, vector<16x32xf32> -> vector<16x32xf32>
    %c0_50 = arith.constant 0 : index
    %c0_51 = arith.constant 0 : index
    %120 = vector.load %arg9[%c0_50, %c0_51] : memref<1x32xf32, #tpu.memory_space<vmem>>, vector<1x32xf32>
    %121 = vector.broadcast %120 : vector<1x32xf32> to vector<16x32xf32>
    %122 = arith.addf %119, %121 : vector<16x32xf32>
    %123 = arith.addf %78, %122 : vector<16x32xf32>
    %124 = vector.shape_cast %123 : vector<16x32xf32> to vector<2x8x32xf32>
    %c0_52 = arith.constant 0 : index
    %c0_53 = arith.constant 0 : index
    %c0_54 = arith.constant 0 : index
    %125 = vector.load %arg14[%c0_52, %c0_53, %c0_54] : memref<2x8x32xf32, #tpu.memory_space<vmem>>, vector<2x8x32xf32>
    tpu.vector_store %arg14[%c0_52, %c0_53, %c0_54], %124 {strides = array<i32>} : memref<2x8x32xf32, #tpu.memory_space<vmem>>, vector<2x8x32xf32>,
    return
  }
  func.func @transform_0(%arg0: i32) -> (i32, i32, i32) {
    %c0_i32 = arith.constant 0 : i32
    %c0_i32_0 = arith.constant 0 : i32
    %c0_i32_1 = arith.constant 0 : i32
    return %arg0, %c0_i32, %c0_i32_0 : i32, i32, i32
  }
  func.func @transform_1(%arg0: i32) -> (i32, i32) {
    %c0_i32 = arith.constant 0 : i32
    %c0_i32_0 = arith.constant 0 : i32
    %c0_i32_1 = arith.constant 0 : i32
    return %c0_i32, %c0_i32_0 : i32, i32
  }
  func.func @transform_2(%arg0: i32) -> (i32, i32) {
    %c0_i32 = arith.constant 0 : i32
    %c0_i32_0 = arith.constant 0 : i32
    %c0_i32_1 = arith.constant 0 : i32
    return %c0_i32, %c0_i32_0 : i32, i32
  }
  func.func @transform_3(%arg0: i32) -> (i32, i32) {
    %c0_i32 = arith.constant 0 : i32
    %c0_i32_0 = arith.constant 0 : i32
    %c0_i32_1 = arith.constant 0 : i32
    return %c0_i32, %c0_i32_0 : i32, i32
  }
  func.func @transform_4(%arg0: i32) -> (i32, i32) {
    %c0_i32 = arith.constant 0 : i32
    %c0_i32_0 = arith.constant 0 : i32
    %c0_i32_1 = arith.constant 0 : i32
    return %c0_i32, %c0_i32_0 : i32, i32
  }
  func.func @transform_5(%arg0: i32) -> (i32, i32) {
    %c0_i32 = arith.constant 0 : i32
    %c0_i32_0 = arith.constant 0 : i32
    %c0_i32_1 = arith.constant 0 : i32
    return %c0_i32, %c0_i32_0 : i32, i32
  }
  func.func @transform_6(%arg0: i32) -> (i32, i32) {
    %c0_i32 = arith.constant 0 : i32
    %c0_i32_0 = arith.constant 0 : i32
    %c0_i32_1 = arith.constant 0 : i32
    return %c0_i32, %c0_i32_0 : i32, i32
  }
  func.func @transform_7(%arg0: i32) -> (i32, i32) {
    %c0_i32 = arith.constant 0 : i32
    %c0_i32_0 = arith.constant 0 : i32
    %c0_i32_1 = arith.constant 0 : i32
    return %c0_i32, %c0_i32_0 : i32, i32
  }
  func.func @transform_8(%arg0: i32) -> (i32, i32) {
    %c0_i32 = arith.constant 0 : i32
    %c0_i32_0 = arith.constant 0 : i32
    %c0_i32_1 = arith.constant 0 : i32
    return %c0_i32, %c0_i32_0 : i32, i32
  }
  func.func @transform_9(%arg0: i32) -> (i32, i32) {
    %c0_i32 = arith.constant 0 : i32
    %c0_i32_0 = arith.constant 0 : i32
    %c0_i32_1 = arith.constant 0 : i32
    return %c0_i32, %c0_i32_0 : i32, i32
  }
  func.func @transform_10(%arg0: i32) -> (i32, i32) {
    %c0_i32 = arith.constant 0 : i32
    %c0_i32_0 = arith.constant 0 : i32
    %c0_i32_1 = arith.constant 0 : i32
    return %c0_i32, %c0_i32_0 : i32, i32
  }
  func.func @transform_11(%arg0: i32) -> (i32, i32) {
    %c0_i32 = arith.constant 0 : i32
    %c0_i32_0 = arith.constant 0 : i32
    %c0_i32_1 = arith.constant 0 : i32
    return %c0_i32, %c0_i32_0 : i32, i32
  }
  func.func @transform_12(%arg0: i32) -> (i32, i32) {
    %c0_i32 = arith.constant 0 : i32
    %c0_i32_0 = arith.constant 0 : i32
    %c0_i32_1 = arith.constant 0 : i32
    return %c0_i32, %c0_i32_0 : i32, i32
  }
  func.func @transform_13(%arg0: i32) -> (i32, i32, i32) {
    %c0_i32 = arith.constant 0 : i32
    %c0_i32_0 = arith.constant 0 : i32
    %c0_i32_1 = arith.constant 0 : i32
    return %arg0, %c0_i32, %c0_i32_0 : i32, i32, i32
  }
}

</mosaic_0001>

<bundles_post_ra>
// kernel: tpu_custom_call.1
= control target key start
LH: loop header
LB: loop body
LE: loop exit
PB: predicated region body
PF: predicated region fallthrough
CT: control target
= control target key end

     0   :  { %vm50_vm0 = vcmask 261120   ;;  %s1757_s0 = inlined_call_operand.vmem [shape: f32[2,8,32], index: 0, kind: input, shape index: {}]   ;;  %s1758_s1 = inlined_call_operand.vmem [shape: bf16[32,768], index: 1, kind: input, shape index: {}]   ;;  %s1759_s2 = inlined_call_operand.vmem [shape: f32[1,768], index: 2, kind: input, shape index: {}]   ;;  %s1760_s3 = inlined_call_operand.vmem [shape: bf16[256,32], index: 3, kind: input, shape index: {}]   ;;  %s1761_s4 = inlined_call_operand.vmem [shape: f32[1,32], index: 4, kind: input, shape index: {}]   ;;  %s1762_s5 = inlined_call_operand.vmem [shape: bf16[32,64], index: 5, kind: input, shape index: {}]   ;;  %s1763_s6 = inlined_call_operand.vmem [shape: f32[1,64], index: 6, kind: input, shape index: {}]   ;;  %s1764_s7 = inlined_call_operand.vmem [shape: bf16[64,32], index: 7, kind: input, shape index: {}]   ;;  %s1765_s8 = inlined_call_operand.vmem [shape: f32[1,32], index: 8, kind: input, shape index: {}]   ;;  %s1766_s9 = inlined_call_operand.vmem [shape: f32[1,32], index: 9, kind: input, shape index: {}]   ;;  %s1767_s10 = inlined_call_operand.vmem [shape: f32[1,32], index: 10, kind: input, shape index: {}]   ;;  %s1768_s11 = inlined_call_operand.vmem [shape: f32[1,32], index: 11, kind: input, shape index: {}]   ;;  %s1769_s12 = inlined_call_operand.vmem [shape: f32[1,32], index: 12, kind: input, shape index: {}]   ;;  %s1770_s13 = inlined_call_operand.hbm [shape: f32[2,8,32], index: 13, kind: output, shape index: {}]  }
   0x1   :  { %v1489_v0 = vld [vmem:[%s1757_s0] sm:$0xff]  ;;  %v1494_v1 = vld [vmem:[%s1757_s0 + $0x8] sm:$0xff] }
   0x2   :  { %v51_v2 = vsel %vm50_vm0, %v1489_v0, 0.0  ;;  %v54_v3 = vsel %vm50_vm0, %v1494_v1, 0.0 }
   0x3   :  { %52 = vadd.xlane.f32.xlu0 %v51_v2 }
   0x7   :  { %55 = vadd.xlane.f32.xlu0 %v54_v3 }
   0x8   :  { %18 = vsyncpa [#allocation3], 0  ;;  %v1318_v14 = vld [vmem:[%s1758_s1 + $0x4] ss:$24 sps:$4 sm:$0xff]   ;;  %v1322_v16 = vld [vmem:[%s1758_s1] ss:$24 sps:$4 sm:$0xff]   ;;  %v109_v45 = vlaneseq }
   0x9   :  { %v1320_v15 = vld [vmem:[%s1758_s1 + $0xc] ss:$24 sps:$4 sm:$0xff]   ;;  %v1323_v17 = vld [vmem:[%s1758_s1 + $0x8] ss:$24 sps:$4 sm:$0xff]   ;;  %202 = vmatprep.subr.bf16.mxu0 %v1318_v14  ;;  %v1326_v19 = vld [vmem:[%s1758_s1 + $0x3c] ss:$24 sps:$4 sm:$0xff]  }
   0xa   :  { %245 = vmatprep.subr.bf16.mxu1 %v1320_v15  ;;  %v1324_v18 = vld [vmem:[%s1758_s1 + $0x34] ss:$24 sps:$4 sm:$0xff]   ;;  %203 = vmatpush1.bf16.msra.mxu0 %v1322_v16  ;;  %v1328_v20 = vld [vmem:[%s1758_s1 + $0x30] ss:$24 sps:$4 sm:$0xff]   ;;  %v1410_v22 = vmov 0   ;;  %v1411_v44 = vmov 0.0  }
   0xb   :  { %246 = vmatpush1.bf16.msra.mxu1 %v1323_v17  ;;  %v1329_v21 = vld [vmem:[%s1758_s1 + $0x38] ss:$24 sps:$4 sm:$0xff]   ;;  %204 = vmatprep.subr.bf16.mxu0 %v1324_v18  ;;  %v1332_v23 = vld [vmem:[%s1758_s1 + $0x14] ss:$24 sps:$4 sm:$0xff]   ;;  %v1148_v32 = vld [vmem:[%s1766_s9] ss:$0 sm:$0xff] }
   0xc   :  { %247 = vmatprep.subr.bf16.mxu1 %v1326_v19  ;;  %234 = vmatprep.mubr.bf16.mxu0 %v1410_v22  ;;  %v1149_v36 = vld [vmem:[%s1767_s10] ss:$0 sm:$0xff]  ;;  %v1330_v40 = vld [vmem:[%s1758_s1 + $0x10] ss:$24 sps:$4 sm:$0xff]   ;;  %v1335_v42 = vld [vmem:[%s1758_s1 + $0x44] ss:$24 sps:$4 sm:$0xff]  }
   0xd   :  { %277 = vmatprep.mubr.bf16.mxu1 %v1410_v22  ;;  %v1333_v43 = vld [vmem:[%s1758_s1 + $0x40] ss:$24 sps:$4 sm:$0xff]   ;;  %vm1412_vm1 = vmmov 0   ;;  %v1555_v46 = vshrl.u32 %v109_v45, 7  ;;  %vm453_vm2 = vcmask 1043456   ;;  %vm425_vm3 = vcmask 64512  }
   0xe   :  { %205 = vmatpush1.bf16.msra.mxu0 %v1328_v20  ;;  %v1561_v48 = vld [vmem:[%s1759_s2] sm:$0x3f]  ;;  %vm1083_vm4 = vcmask 523264   ;;  %s1413_s22 = smov [#allocation2]  }
   0xf   :  { %248 = vmatpush1.bf16.msra.mxu1 %v1329_v21  ;;  %288 = vmatprep.subr.bf16.mxu0 %v1332_v23  ;;  %v119_v47 = vsub.s32 2, %v1555_v46  ;;  %v111_v50 = vsub.s32 0, %v1555_v46  ;;  %v127_v56 = vsub.s32 4, %v1555_v46  ;;  %v131_v60 = vsub.s32 5, %v1555_v46  ;;  %s1137_s23 = sshll.u32 %s1413_s22, 4  ;;  %s1138_s23 = int_to_ptr.vmem [resolvable:$true] %s1137_s23 }
  0x10   :  { %1244 = vmatprep.subr.bf16.mxu1 %v1411_v44  ;;  %s1386_s24 = scalar_lea.vmem %s1138_s23, 256  ;;  %p1391_p1 = scmp.lt.s32.totalorder %s1138_s23, %s1138_s23 }
  0x11   :  { %v120_v49 = vrot.slane %v1561_v48, %v119_v47  ;;  %v112_v57 = vrot.slane %v1561_v48, %v111_v50  ;;  %p1387_p0 = scmp.ne.s32.totalorder %s1138_s23, %s1386_s24  ;;  %p1392_p2 = scmp.lt.s32.totalorder %s1386_s24, %s1386_s24 }
  0x13   :  { %p1393_p3 = por %p1392_p2, %p1391_p1 }
  0x15   :  { %p1394_p4 = pnand %p1393_p3, %p1387_p0 }
  0x90   :  { %v53_v4 = vpop.xlane.xlu0 %52 }
  0x91   :  { %v58_v5 = vmul.f32 0.03125, %v53_v4  ;;  %v128_v4 = vrot.slane %v1561_v48, %v127_v56 }
  0x93   :  { %v60_v6 = vsub.f32 %v1489_v0, %v58_v5 }
  0x94   :  { %v56_v7 = vpop.xlane.xlu0 %55 }
  0x95   :  { %v59_v8 = vmul.f32 0.03125, %v56_v7  ;;  %v62_v9 = vmul.f32 %v60_v6, %v60_v6 }
  0x97   :  { %v61_v10 = vsub.f32 %v1494_v1, %v59_v8  ;;  %v64_v11 = vsel %vm50_vm0, %v62_v9, 0.0 }
  0x98   :  { %65 = vadd.xlane.f32.xlu1 %v64_v11 }
  0x99   :  { %v63_v12 = vmul.f32 %v61_v10, %v61_v10 }
  0x9b   :  { %v67_v13 = vsel %vm50_vm0, %v63_v12, 0.0 }
  0x9c   :  { %68 = vadd.xlane.f32.xlu1 %v67_v13 }
 0x125   :  { %v66_v24 = vpop.xlane.xlu1 %65 }
 0x126   :  { %v70_v25 = vmul.f32 0.03125, %v66_v24 }
 0x128   :  { %v72_v26 = vadd.f32 1e-05, %v70_v25 }
 0x129   :  { %v69_v27 = vpop.xlane.xlu1 %68 }
 0x12a   :  { %1358 = vrsqrt.f32 %v72_v26  ;;  %v71_v28 = vmul.f32 0.03125, %v69_v27 }
 0x12c   :  { %v73_v29 = vadd.f32 1e-05, %v71_v28 }
 0x12e   :  { %1360 = vrsqrt.f32 %v73_v29 }
 0x134   :  { %v1359_v30 = vpop.eup %1358 }
 0x135   :  { %v76_v31 = vmul.f32 %v1359_v30, %v60_v6  ;;  %v132_v6 = vrot.slane %v1561_v48, %v131_v60 }
 0x137   :  { %v84_v35 = vmul.f32 %v1148_v32, %v76_v31 }
 0x138   :  { %v1361_v33 = vpop.eup %1360 }
 0x139   :  { %v77_v34 = vmul.f32 %v1361_v33, %v61_v10  ;;  %v92_v38 = vadd.f32 %v1149_v36, %v84_v35 }
 0x13b   :  { %v85_v37 = vmul.f32 %v1148_v32, %v77_v34 }
 0x13d   :  { %v93_v39 = vadd.f32 %v1149_v36, %v85_v37 }
 0x13f   :  { %v94_v41 = vpack.c.bf16 %v93_v39, %v92_v38 }
 0x141   :  { %1162 = vmatmul.mubr.msk.bf16.vlgmr.msra.gmra.mrb[0].mxu0 %vm50_vm0, %v94_v41  ;;  %1163 = vmatmul.mubr.msk.bf16.vlgmr.msra.gmra.mrb[0].mxu1 %vm50_vm0, %v94_v41 }
 0x142   :  { %289 = vmatpush1.bf16.msra.mxu0 %v1330_v40  ;;  %320 = vmatprep.mubr.bf16.mxu0 %v1410_v22 }
 0x143   :  { %290 = vmatprep.subr.bf16.mxu0 %v1335_v42  ;;  %1246 = vmatprep.mubr.msk.bf16.mxu1 %vm1412_vm1, %v1411_v44 }
 0x146   :  { %291 = vmatpush1.bf16.msra.mxu0 %v1333_v43 }
 0x147   :  { %1250 = vmatprep.subr.bf16.mxu0 %v1411_v44 }
 0x149   :  { %1164 = vmatmul.mubr.msk.bf16.vlgmr.msra.gmra.mrb[4].mxu0 %vm50_vm0, %v94_v41 }
 0x14a   :  { %1252 = vmatprep.mubr.msk.bf16.mxu0 %vm1412_vm1, %v1411_v44 }
 0x214   :  { %v236_v51 = vpop.f32.mrb[0].mxu0  ;;  %v279_v52 = vpop.f32.mrb[0].mxu1 }
 0x215   :  { %v280_v53 = vadd.f32 %v279_v52, %v120_v49  ;;  %v1565_v54 = vpop.f32.mrb[1].mxu0  ;;  %v1567_v55 = vpop.f32.mrb[1].mxu1  ;;  %v237_v5 = vadd.f32 %v236_v51, %v112_v57 }
 0x216   :  { %v240_v58 = vpop.f32.mrb[2].mxu0  ;;  %v283_v59 = vpop.f32.mrb[2].mxu1 }
 0x217   :  { %v333_v61 = vpack.c.bf16 %v280_v53, %v280_v53  ;;  %v284_v62 = vadd.f32 %v283_v59, %v120_v49  ;;  %v1572_v63 = vpop.f32.mrb[3].mxu0  ;;  %v1574_v2 = vpop.f32.mrb[3].mxu1  ;;  %v241_v7 = vadd.f32 %v240_v58, %v112_v57  ;;  %v331_v11 = vpack.c.bf16 %v237_v5, %v237_v5 }
 0x218   :  { %v123_v53 = vsub.s32 3, %v1555_v46  ;;  %v115_v57 = vsub.s32 1, %v1555_v46 }
 0x219   :  { %v339_v3 = vpack.c.bf16 %v284_v62, %v284_v62  ;;  %1245 = vmatpush3.bf16.xpose.msra.mxu1 %v333_v61  ;;  %v337_v17 = vpack.c.bf16 %v241_v7, %v241_v7 }
 0x21a   :  { %1256 = vmatprep.subr.bf16.mxu1 %v1411_v44  ;;  %v124_v56 = vrot.slane %v1561_v48, %v123_v53  ;;  %v1340_v53 = vld [vmem:[%s1760_s3 + $0x50] sm:$0xff]  }
 0x21b   :  { %1251 = vmatpush3.bf16.xpose.msra.mxu0 %v339_v3  ;;  %v116_v3 = vrot.slane %v1561_v48, %v115_v57  ;;  %v1342_v57 = vld [vmem:[%s1760_s3 + $0x58] sm:$0xff]  }
 0x21c   :  { %v322_v8 = vpop.f32.mrb[4].mxu0  ;;  %1262 = vmatprep.subr.bf16.mxu0 %v1411_v44  ;;  %v282_v59 = vadd.f32 %v1567_v55, %v124_v56  ;;  %v286_v62 = vadd.f32 %v1574_v2, %v124_v56  ;;  %v1341_v56 = vld [vmem:[%s1760_s3 + $0x10] sm:$0xff]  }
 0x21d   :  { %v323_v9 = vadd.f32 %v322_v8, %v128_v4  ;;  %v324_v10 = vpop.f32.mrb[5].mxu0  ;;  %v239_v46 = vadd.f32 %v1565_v54, %v116_v3  ;;  %v243_v48 = vadd.f32 %v1572_v63, %v116_v3  ;;  %v1348_v3 = vld [vmem:[%s1760_s3 + $0x70] sm:$0xff]  }
 0x21e   :  { %v325_v12 = vadd.f32 %v324_v10, %v132_v6  ;;  %v326_v13 = vpop.f32.mrb[6].mxu0  ;;  %v340_v8 = vpack.c.bf16 %v286_v62, %v286_v62  ;;  %v1347_v62 = vld [vmem:[%s1760_s3 + $0x28] sm:$0xff]  }
 0x21f   :  { %v335_v14 = vpack.c.bf16 %v323_v9, %v323_v9  ;;  %v327_v15 = vadd.f32 %v326_v13, %v128_v4  ;;  %v328_v16 = vpop.f32.mrb[7].mxu0  ;;  %v332_v55 = vpack.c.bf16 %v239_v46, %v239_v46  ;;  %v338_v2 = vpack.c.bf16 %v243_v48, %v243_v48 }
 0x220   :  { %v336_v18 = vpack.c.bf16 %v325_v12, %v325_v12  ;;  %v329_v19 = vadd.f32 %v328_v16, %v132_v6  ;;  %1247 = vmatmul.mubr.bf16.vlgmr.msra.gmra.mrb[4].mxu1 %v331_v11  ;;  %v334_v6 = vpack.c.bf16 %v282_v59, %v282_v59  ;;  %v1344_v59 = vld [vmem:[%s1760_s3 + $0x60] sm:$0xff]  }
 0x221   :  { %v455_v20 = vsel %vm453_vm2, %v335_v14, 0  ;;  %v341_v21 = vpack.c.bf16 %v327_v15, %v327_v15  ;;  %1258 = vmatprep.mubr.msk.bf16.mxu1 %vm1412_vm1, %v1411_v44 }
 0x222   :  { %v1584_v22 = vsel %vm453_vm2, %v336_v18, 0  ;;  %v342_v23 = vpack.c.bf16 %v329_v19, %v329_v19  ;;  %1253 = vmatmul.mubr.bf16.vlgmr.msra.gmra.mrb[8].mxu0 %v337_v17  ;;  %1257 = vmatpush3.bf16.msra.mxu1 %v455_v20 }
 0x223   :  { %v501_v24 = vsel %vm453_vm2, %v341_v21, 0  ;;  %1268 = vmatprep.subr.bf16.mxu1 %v1411_v44  ;;  %1264 = vmatprep.mubr.msk.bf16.mxu0 %vm1412_vm1, %v1411_v44 }
 0x224   :  { %v1591_v25 = vsel %vm453_vm2, %v342_v23, 0  ;;  %1263 = vmatpush3.bf16.msra.mxu0 %v501_v24 }
 0x225   :  { %1274 = vmatprep.subr.bf16.mxu0 %v1411_v44 }
 0x2f3   :  { %v377_v26 = vpop.f32.mrb[4].mxu1 }
 0x2f4   :  { %v423_v27 = vmul.f32 0.35355338, %v377_v26  ;;  %v1248_v28 = vpop.f32.mrb[5].mxu1 }
 0x2f5   :  { %v380_v29 = vpop.f32.mrb[6].mxu1  ;;  %v417_v30 = vpop.f32.mrb[8].mxu0 }
 0x2f6   :  { %v424_v31 = vmul.f32 0.35355338, %v417_v30  ;;  %v1249_v32 = vpop.f32.mrb[7].mxu1  ;;  %v1254_v33 = vpop.f32.mrb[9].mxu0  ;;  %v426_v34 = vsel %vm425_vm3, %v423_v27, -inf }
 0x2f7   :  { %v420_v35 = vpop.f32.mrb[10].mxu0  ;;  %427 = vmax.xlane.f32.xlu0 %v426_v34 }
 0x2f8   :  { %v1255_v36 = vpop.f32.mrb[11].mxu0  ;;  %v429_v37 = vsel %vm425_vm3, %v424_v31, -inf }
 0x2f9   :  { %430 = vmax.xlane.f32.xlu1 %v429_v37 }
 0x384   :  { %v428_v38 = vpop.xlane.xlu0 %427 }
 0x385   :  { %v432_v39 = vsub.f32 %v423_v27, %v428_v38  ;;  %v1336_v38 = vld [vmem:[%s1760_s3 + $0x40] sm:$0xff]  }
 0x386   :  { %v431_v40 = vpop.xlane.xlu1 %430 }
 0x387   :  { %v434_v41 = vmul.f32 1.442695, %v432_v39  ;;  %v433_v42 = vsub.f32 %v424_v31, %v431_v40 }
 0x389   :  { %1362 = vpow2.f32 %v434_v41  ;;  %v436_v43 = vmul.f32 1.442695, %v433_v42 }
 0x38b   :  { %1364 = vpow2.f32 %v436_v43 }
 0x393   :  { %v1363_v45 = vpop.eup %1362 }
 0x394   :  { %v438_v47 = vsel %vm425_vm3, %v1363_v45, 0.0 }
 0x395   :  { %v1365_v49 = vpop.eup %1364  ;;  %439 = vadd.xlane.f32.xlu0 %v438_v47 }
 0x396   :  { %v441_v50 = vsel %vm425_vm3, %v1365_v49, 0.0 }
 0x397   :  { %442 = vadd.xlane.f32.xlu1 %v441_v50  ;;  %v1338_v50 = vld [vmem:[%s1760_s3 + $0x48] sm:$0xff]  }
 0x422   :  { %v440_v51 = vpop.xlane.xlu0 %439 }
 0x423   :  { %1366 = vrcp.f32 %v440_v51 }
 0x424   :  { %v443_v52 = vpop.xlane.xlu1 %442 }
 0x425   :  { %1368 = vrcp.f32 %v443_v52  ;;  %v1339_v52 = vld [vmem:[%s1760_s3 + $0x8] sm:$0xff]  }
 0x42d   :  { %v1367_v58 = vpop.eup %1366 }
 0x42e   :  { %v446_v60 = vmul.f32 %v1367_v58, %v1363_v45  ;;  %v1337_v45 = vld [vmem:[%s1760_s3] sm:$0xff]   ;;  %v1343_v58 = vld [vmem:[%s1760_s3 + $0x18] sm:$0xff]  }
 0x42f   :  { %v1369_v61 = vpop.eup %1368 }
 0x430   :  { %v447_v4 = vmul.f32 %v1369_v61, %v1365_v49  ;;  %v448_v5 = vpack.c.bf16 %v446_v60, %v446_v60  ;;  %v1345_v60 = vld [vmem:[%s1760_s3 + $0x20] sm:$0xff]   ;;  %v1346_v61 = vld [vmem:[%s1760_s3 + $0x68] sm:$0xff]  }
 0x432   :  { %1259 = vmatmul.mubr.msk.bf16.vlgmr.msra.gmra.mrb[8].mxu1 %vm425_vm3, %v448_v5  ;;  %v449_v7 = vpack.c.bf16 %v447_v4, %v447_v4  ;;  %v1349_v4 = vld [vmem:[%s1760_s3 + $0x30] sm:$0xff]   ;;  %v1350_v5 = vld [vmem:[%s1760_s3 + $0x78] sm:$0xff]  }
 0x433   :  { %1269 = vmatpush3.bf16.xpose.msra.mxu1 %v334_v6  ;;  %1270 = vmatprep.mubr.msk.bf16.mxu1 %vm1412_vm1, %v1411_v44  ;;  %v1351_v6 = vld [vmem:[%s1760_s3 + $0x38] sm:$0xff]  }
 0x434   :  { %1265 = vmatmul.mubr.msk.bf16.vlgmr.msra.gmra.mrb[12].mxu0 %vm425_vm3, %v449_v7  ;;  %1280 = vmatprep.subr.bf16.mxu1 %v1411_v44 }
 0x435   :  { %1275 = vmatpush3.bf16.xpose.msra.mxu0 %v340_v8  ;;  %1276 = vmatprep.mubr.msk.bf16.mxu0 %vm1412_vm1, %v1411_v44 }
 0x436   :  { %1286 = vmatprep.subr.bf16.mxu0 %v1411_v44 }
 0x43a   :  { %1271 = vmatmul.mubr.bf16.vlgmr.msra.gmra.mrb[12].mxu1 %v332_v55 }
 0x43b   :  { %1281 = vmatpush3.bf16.msra.mxu1 %v1584_v22  ;;  %1282 = vmatprep.mubr.msk.bf16.mxu1 %vm1412_vm1, %v1411_v44 }
 0x43c   :  { %1277 = vmatmul.mubr.bf16.vlgmr.msra.gmra.mrb[16].mxu0 %v338_v2  ;;  %1214 = vmatprep.subr.bf16.mxu1 %v1336_v38 }
 0x43d   :  { %1287 = vmatpush3.bf16.msra.mxu0 %v1591_v25  ;;  %1288 = vmatprep.mubr.msk.bf16.mxu0 %vm1412_vm1, %v1411_v44 }
 0x43e   :  { %1292 = vmatprep.subr.bf16.mxu0 %v1411_v44 }
 0x505   :  { %v1621_v54 = vpop.f32.mrb[8].mxu1 }
 0x506   :  { %v1260_v63 = vpop.f32.mrb[9].mxu1 }
 0x507   :  { %v494_v9 = vpop.f32.mrb[10].mxu1  ;;  %v1623_v10 = vpop.f32.mrb[12].mxu0 }
 0x508   :  { %v741_v11 = vpack.c.bf16 %v1623_v10, %v1621_v54  ;;  %v1261_v12 = vpop.f32.mrb[11].mxu1  ;;  %v1266_v13 = vpop.f32.mrb[13].mxu0 }
 0x509   :  { %v540_v14 = vpop.f32.mrb[14].mxu0 }
 0x50a   :  { %v1267_v15 = vpop.f32.mrb[15].mxu0  ;;  %v1169_v14 = vld [vmem:[%s1761_s4] ss:$0 sm:$0xff] }
 0x50d   :  { %v577_v16 = vpop.f32.mrb[12].mxu1 }
 0x50e   :  { %v623_v17 = vmul.f32 0.35355338, %v577_v16  ;;  %v1272_v18 = vpop.f32.mrb[13].mxu1 }
 0x50f   :  { %v580_v19 = vpop.f32.mrb[14].mxu1  ;;  %v617_v20 = vpop.f32.mrb[16].mxu0 }
 0x510   :  { %v624_v21 = vmul.f32 0.35355338, %v617_v20  ;;  %v1273_v22 = vpop.f32.mrb[15].mxu1  ;;  %v1278_v23 = vpop.f32.mrb[17].mxu0  ;;  %v625_v24 = vsel %vm425_vm3, %v623_v17, -inf }
 0x511   :  { %v620_v25 = vpop.f32.mrb[18].mxu0  ;;  %626 = vmax.xlane.f32.xlu0 %v625_v24 }
 0x512   :  { %v1279_v26 = vpop.f32.mrb[19].mxu0  ;;  %v628_v27 = vsel %vm425_vm3, %v624_v21, -inf }
 0x513   :  { %629 = vmax.xlane.f32.xlu1 %v628_v27 }
 0x59e   :  { %v627_v28 = vpop.xlane.xlu0 %626 }
 0x59f   :  { %v631_v29 = vsub.f32 %v623_v17, %v627_v28 }
 0x5a0   :  { %v630_v30 = vpop.xlane.xlu1 %629 }
 0x5a1   :  { %v633_v31 = vmul.f32 1.442695, %v631_v29  ;;  %v632_v32 = vsub.f32 %v624_v21, %v630_v30 }
 0x5a3   :  { %1370 = vpow2.f32 %v633_v31  ;;  %v635_v33 = vmul.f32 1.442695, %v632_v32  ;;  %v1352_v31 = vld [vmem:[%s1762_s5] sm:$0xff]   ;;  %v1353_v32 = vld [vmem:[%s1762_s5 + $0x8] sm:$0xff]  }
 0x5a5   :  { %1372 = vpow2.f32 %v635_v33 }
 0x5ad   :  { %v1371_v34 = vpop.eup %1370 }
 0x5ae   :  { %v637_v35 = vsel %vm425_vm3, %v1371_v34, 0.0 }
 0x5af   :  { %v1373_v36 = vpop.eup %1372  ;;  %638 = vadd.xlane.f32.xlu0 %v637_v35 }
 0x5b0   :  { %v640_v37 = vsel %vm425_vm3, %v1373_v36, 0.0 }
 0x5b1   :  { %641 = vadd.xlane.f32.xlu1 %v640_v37 }
 0x63c   :  { %v639_v39 = vpop.xlane.xlu0 %638 }
 0x63d   :  { %1374 = vrcp.f32 %v639_v39 }
 0x63e   :  { %v642_v40 = vpop.xlane.xlu1 %641 }
 0x63f   :  { %1376 = vrcp.f32 %v642_v40  ;;  %v1186_v40 = vld [vmem:[%s1768_s11] ss:$0 sm:$0xff] }
 0x647   :  { %v1375_v41 = vpop.eup %1374 }
 0x648   :  { %v645_v42 = vmul.f32 %v1375_v41, %v1371_v34 }
 0x649   :  { %v1377_v43 = vpop.eup %1376 }
 0x64a   :  { %v646_v47 = vmul.f32 %v1377_v43, %v1373_v36  ;;  %v647_v49 = vpack.c.bf16 %v645_v42, %v645_v42 }
 0x64c   :  { %1283 = vmatmul.mubr.msk.bf16.vlgmr.msra.gmra.mrb[16].mxu1 %vm425_vm3, %v647_v49  ;;  %v648_v51 = vpack.c.bf16 %v646_v47, %v646_v47  ;;  %v1187_v47 = vld [vmem:[%s1769_s12] ss:$0 sm:$0xff] }
 0x64d   :  { %1215 = vmatpush3.bf16.msra.mxu1 %v1337_v45 }
 0x64e   :  { %1289 = vmatmul.mubr.msk.bf16.vlgmr.msra.gmra.mrb[20].mxu0 %vm425_vm3, %v648_v51  ;;  %1216 = vmatprep.subr.bf16.mxu1 %v1338_v50 }
 0x64f   :  { %1296 = vmatprep.mubr.msk.bf16.mxu0 %vm1412_vm1, %v1411_v44  ;;  %1293 = vmatpush3.bf16.msra.mxu0 %v1352_v31 }
 0x650   :  { %1294 = vmatprep.subr.bf16.mxu0 %v1411_v44 }
 0x651   :  { %1217 = vmatpush3.bf16.msra.mxu1 %v1339_v52 }
 0x652   :  { %1218 = vmatprep.subr.bf16.mxu1 %v1340_v53  ;;  %v1354_v53 = vld [vmem:[%s1764_s7] sm:$0xff]  }
 0x653   :  { %1295 = vmatpush3.bf16.msra.mxu0 %v1353_v32 }
 0x654   :  { %1300 = vmatprep.subr.bf16.mxu0 %v1411_v44 }
 0x655   :  { %1219 = vmatpush3.bf16.msra.mxu1 %v1341_v56  ;;  %v1355_v56 = vld [vmem:[%s1764_s7 + $0x8] sm:$0xff]  }
 0x656   :  { %1220 = vmatprep.subr.bf16.mxu1 %v1342_v57  ;;  %v1356_v57 = vld [vmem:[%s1764_s7 + $0x10] sm:$0xff]  }
 0x659   :  { %1221 = vmatpush3.bf16.msra.mxu1 %v1343_v58  ;;  %v1357_v58 = vld [vmem:[%s1764_s7 + $0x18] sm:$0xff]  }
 0x65a   :  { %1222 = vmatprep.subr.bf16.mxu1 %v1344_v59  ;;  %v1188_v59 = vld [vmem:[%s1763_s6] ss:$0 sm:$0xff] }
 0x65d   :  { %1223 = vmatpush3.bf16.msra.mxu1 %v1345_v60 }
 0x65e   :  { %1224 = vmatprep.subr.bf16.mxu1 %v1346_v61 }
 0x661   :  { %1225 = vmatpush3.bf16.msra.mxu1 %v1347_v62 }
 0x662   :  { %1226 = vmatprep.subr.bf16.mxu1 %v1348_v3 }
 0x665   :  { %1227 = vmatpush3.bf16.msra.mxu1 %v1349_v4 }
 0x666   :  { %1228 = vmatprep.subr.bf16.mxu1 %v1350_v5 }
 0x669   :  { %1229 = vmatpush3.bf16.msra.mxu1 %v1351_v6 }
 0x71f   :  { %v689_v7 = vpop.f32.mrb[16].mxu1 }
 0x720   :  { %v1284_v8 = vpop.f32.mrb[17].mxu1 }
 0x721   :  { %v692_v46 = vpop.f32.mrb[18].mxu1  ;;  %v735_v48 = vpop.f32.mrb[20].mxu0 }
 0x722   :  { %v742_v55 = vpack.c.bf16 %v735_v48, %v689_v7  ;;  %v1285_v2 = vpop.f32.mrb[19].mxu1  ;;  %v1290_v63 = vpop.f32.mrb[21].mxu0 }
 0x723   :  { %v738_v9 = vpop.f32.mrb[22].mxu0 }
 0x724   :  { %v1291_v12 = vpop.f32.mrb[23].mxu0  ;;  %910 = vmatprep.mubr.bf16.mxu1 %v742_v55 }
 0x725   :  { %911 = vmatmul.mubr.bf16.vlgmr.msra.gmra.mrb[20].mxu1 %v741_v11 }
 0x7f8   :  { %v1230_v13 = vpop.f32.mrb[20].mxu1 }
 0x7f9   :  { %v1231_v15 = vpop.f32.mrb[21].mxu1 }
 0x7fa   :  { %v1232_v16 = vadd.f32 %v1231_v15, %v1230_v13  ;;  %v1233_v17 = vpop.f32.mrb[22].mxu1  ;;  %v1192_v13 = vld [vmem:[%s1765_s8] ss:$0 sm:$0xff] }
 0x7fb   :  { %v1234_v18 = vpop.f32.mrb[23].mxu1 }
 0x7fc   :  { %v913_v19 = vadd.f32 %v1232_v16, %v1169_v14  ;;  %v1235_v20 = vadd.f32 %v1234_v18, %v1233_v17 }
 0x7fe   :  { %v1690_v21 = vadd.f32 %v913_v19, %v1489_v0  ;;  %v916_v22 = vadd.f32 %v1235_v20, %v1169_v14 }
 0x800   :  { %v1693_v23 = vadd.f32 %v916_v22, %v1494_v1  ;;  %v923_v54 = vsel %vm50_vm0, %v1690_v21, 0.0 }
 0x801   :  { %924 = vadd.xlane.f32.xlu0 %v923_v54 }
 0x802   :  { %v926_v10 = vsel %vm50_vm0, %v1693_v23, 0.0 }
 0x803   :  { %927 = vadd.xlane.f32.xlu1 %v926_v10 }
 0x88e   :  { %v925_v11 = vpop.xlane.xlu0 %924 }
 0x88f   :  { %v929_v24 = vmul.f32 0.03125, %v925_v11 }
 0x890   :  { %v928_v25 = vpop.xlane.xlu1 %927 }
 0x891   :  { %v931_v26 = vsub.f32 %v1690_v21, %v929_v24  ;;  %v930_v27 = vmul.f32 0.03125, %v928_v25 }
 0x893   :  { %v932_v0 = vsub.f32 %v1693_v23, %v930_v27  ;;  %v933_v28 = vmul.f32 %v931_v26, %v931_v26 }
 0x895   :  { %v935_v1 = vsel %vm50_vm0, %v933_v28, 0.0  ;;  %v934_v29 = vmul.f32 %v932_v0, %v932_v0 }
 0x896   :  { %936 = vadd.xlane.f32.xlu0 %v935_v1 }
 0x897   :  { %v938_v30 = vsel %vm50_vm0, %v934_v29, 0.0 }
 0x898   :  { %939 = vadd.xlane.f32.xlu1 %v938_v30 }
 0x923   :  { %v937_v33 = vpop.xlane.xlu0 %936 }
 0x924   :  { %v941_v34 = vmul.f32 0.03125, %v937_v33 }
 0x925   :  { %v940_v35 = vpop.xlane.xlu1 %939 }
 0x926   :  { %v943_v36 = vadd.f32 1e-05, %v941_v34  ;;  %v942_v37 = vmul.f32 0.03125, %v940_v35 }
 0x928   :  { %1378 = vrsqrt.f32 %v943_v36  ;;  %v944_v38 = vadd.f32 1e-05, %v942_v37 }
 0x92a   :  { %1380 = vrsqrt.f32 %v944_v38 }
 0x932   :  { %v1379_v39 = vpop.eup %1378 }
 0x933   :  { %v947_v41 = vmul.f32 %v1379_v39, %v931_v26 }
 0x934   :  { %v1381_v42 = vpop.eup %1380 }
 0x935   :  { %v955_v43 = vmul.f32 %v1186_v40, %v947_v41  ;;  %v948_v45 = vmul.f32 %v1381_v42, %v932_v0 }
 0x937   :  { %v956_v49 = vmul.f32 %v1186_v40, %v948_v45  ;;  %v963_v50 = vadd.f32 %v1187_v47, %v955_v43 }
 0x939   :  { %v964_v51 = vadd.f32 %v1187_v47, %v956_v49 }
 0x93b   :  { %v965_v52 = vpack.c.bf16 %v964_v51, %v963_v50 }
 0x93d   :  { %1297 = vmatmul.mubr.msk.bf16.vlgmr.msra.gmra.mrb[24].mxu0 %vm50_vm0, %v965_v52 }
 0x93e   :  { %1308 = vmatprep.mubr.msk.bf16.mxu0 %vm1412_vm1, %v1411_v44  ;;  %1301 = vmatpush3.bf16.msra.mxu0 %v1354_v53 }
 0x93f   :  { %1302 = vmatprep.subr.bf16.mxu0 %v1411_v44 }
 0x942   :  { %1303 = vmatpush3.bf16.msra.mxu0 %v1355_v56 }
 0x943   :  { %1304 = vmatprep.subr.bf16.mxu0 %v1411_v44 }
 0x946   :  { %1305 = vmatpush3.bf16.msra.mxu0 %v1356_v57 }
 0x947   :  { %1306 = vmatprep.subr.bf16.mxu0 %v1411_v44 }
 0x94a   :  { %1307 = vmatpush3.bf16.msra.mxu0 %v1357_v58 }
 0xa10   :  { %v1026_v60 = vpop.f32.mrb[24].mxu0 }
 0xa11   :  { %v1027_v61 = vadd.f32 %v1188_v59, %v1026_v60  ;;  %v1298_v62 = vpop.f32.mrb[25].mxu0 }
 0xa12   :  { %v1029_v3 = vpop.f32.mrb[26].mxu0 }
 0xa13   :  { %v1035_v4 = vmul.f32 0.70710677, %v1027_v61  ;;  %v1030_v5 = vadd.f32 %v1188_v59, %v1029_v3  ;;  %v1299_v6 = vpop.f32.mrb[27].mxu0  ;;  %v1033_v48 = vmul.f32 0.5, %v1027_v61 }
 0xa15   :  { %1382 = verf.f32 %v1035_v4  ;;  %v1036_v7 = vmul.f32 0.70710677, %v1030_v5  ;;  %v1034_v55 = vmul.f32 0.5, %v1030_v5 }
 0xa17   :  { %1384 = verf.f32 %v1036_v7 }
 0xa1f   :  { %v1383_v44 = vpop.eup %1382 }
 0xa20   :  { %v1039_v8 = vadd.f32 1.0, %v1383_v44 }
 0xa21   :  { %v1385_v46 = vpop.eup %1384 }
 0xa22   :  { %v1040_v2 = vadd.f32 1.0, %v1385_v46  ;;  %v1041_v63 = vmul.f32 %v1039_v8, %v1033_v48 }
 0xa24   :  { %v1042_v9 = vmul.f32 %v1040_v2, %v1034_v55 }
 0xa26   :  { %v1043_v12 = vpack.c.bf16 %v1042_v9, %v1041_v63 }
 0xa28   :  { %1309 = vmatmul.mubr.msk.bf16.vlgmr.msra.gmra.mrb[28].mxu0 %vm1083_vm4, %v1043_v12 }
 0xafb   :  { %v1121_v14 = vpop.f32.mrb[28].mxu0 }
 0xafc   :  { %v1122_v15 = vadd.f32 %v1192_v13, %v1121_v14  ;;  %v1310_v16 = vpop.f32.mrb[29].mxu0 }
 0xafd   :  { %v1124_v17 = vpop.f32.mrb[30].mxu0 }
 0xafe   :  { %v1128_v18 = vadd.f32 %v1122_v15, %v1690_v21  ;;  %v1125_v19 = vadd.f32 %v1192_v13, %v1124_v17  ;;  %v1311_v20 = vpop.f32.mrb[31].mxu0 }
 0xb00   :  { %1130 = vst.msk [vmem:[#allocation2] sm:$0xff] %vm50_vm0, %v1128_v18  ;;  %v1129_v22 = vadd.f32 %v1125_v19, %v1693_v23 }
 0xb02   :  { %1131 = vst.msk [vmem:[#allocation2 + $0x8] sm:$0xff] %vm50_vm0, %v1129_v22 }
 0xb03   :  { %1397 = shalt.err (!%p1394_p4)
}
 0xb04   :  { %s1398_s26 = scalar_lea.hbm %s1770_s13, 256 }
 0xb05   :  { %p1399_p5 = scmp.ne.s32.totalorder %s1770_s13, %s1398_s26  ;;  %p1402_p6 = scmp.lt.u32.totalorder %s1398_s26, %s1770_s13 }
 0xb07   :  { %p1404_p7 = pnand %p1402_p6, %p1399_p5 }
 0xb09   :  { %1407 = shalt.err (!%p1404_p7)
}
 0xb0a   :  { %s1414_s3 = smov 128   ;;  %s1415_s4 = smov 8  }
 0xb0b   :  { %1143 = dma.vmem_to_hbm [thread:$0]  %s1138_s23, 256, %s1770_s13, [#allocation3], %s1414_s3, %s1414_s3, %s1415_s4  }
 0xb0c   :  { %1408 = dma.done.wait [#allocation3], 256  }
 0xb0d   :  { %1409 = vsyncadd [#allocation3], 4294967040 }
 0xb0e   :  { %1147 = vsyncpa [#allocation3], 1 }

</bundles_post_ra>
